<compile_context>
chip_gen: v7x
topology: tpu7x:2x2x1
jax: 0.10.0
libtpu: 0.0.40
codegen_flags: <defaults>
</compile_context>

<pallas_src>
import jax
import jax.numpy as jnp
from jax.experimental import pallas as pl
from jax.experimental.pallas import tpu as pltpu


def _center_intersection_kernel(emb_ref, w1_ref, b1_ref, w2_ref, b2_ref, out_ref):
    # emb_ref: (N, TB, D)   w*_ref: (D, D) already (in, out)   b*_ref: (1, D)
    # out_ref: (TB, D)
    n = emb_ref.shape[0]

    w1 = w1_ref[...]
    w2 = w2_ref[...]
    b1 = b1_ref[...]
    b2 = b2_ref[...]

    # Per-conjunct attention logits.  N is small and static, so unroll: every
    # op is a plain 2-D MXU matmul or VPU elementwise op (no in-kernel
    # reshapes / transposes / 3-D contractions).
    embs = [emb_ref[i] for i in range(n)]            # each (TB, D)
    logits = []
    for e in embs:
        h = jnp.maximum(
            jnp.dot(e, w1,
                    preferred_element_type=jnp.float32,
                    precision=jax.lax.Precision.HIGHEST) + b1,
            0.0)
        logits.append(
            jnp.dot(h, w2,
                    preferred_element_type=jnp.float32,
                    precision=jax.lax.Precision.HIGHEST) + b2)

    # Softmax over the conjunct axis (dim=0), fused with the weighted sum.
    m = logits[0]
    for l in logits[1:]:
        m = jnp.maximum(m, l)
    exps = [jnp.exp(l - m) for l in logits]
    denom = exps[0]
    for e in exps[1:]:
        denom = denom + e
    inv = pl.reciprocal(denom, approx=False)

    acc = exps[0] * inv * embs[0].astype(jnp.float32)
    for i in range(1, n):
        acc = acc + exps[i] * inv * embs[i].astype(jnp.float32)
    out_ref[...] = acc.astype(out_ref.dtype)


def _pick_batch_tile(b):
    # Small B: one resident block (full extent satisfies the tiling rule).
    # Large B: a multiple of 8, capped at 256 rows so 2x-buffered (N, TB, D)
    # input + (TB, D) output blocks fit v7x's 64 MiB VMEM with headroom.
    if b <= 256:
        return b
    for tb in (256, 128, 64, 32, 16, 8):
        if b % tb == 0:
            return tb
    return b  # fallback: single resident block


def center_intersection(embeddings, w1, b1, w2, b2):
    """embeddings: (N, D) or (N, B, D); w1/w2: (D, D) in PyTorch (out, in)
    layout; b1/b2: (D,).  Returns (D,) or (B, D)."""
    squeeze_batch = embeddings.ndim == 2
    if squeeze_batch:
        n, d = embeddings.shape
        embeddings = embeddings.reshape(n, 1, d)
    n, b, d = embeddings.shape

    # Free glue outside the kernel: weights to (in, out) so the kernel does a
    # plain `x @ w`; biases get a sublane dim.
    w1t = jnp.transpose(w1)
    w2t = jnp.transpose(w2)
    b1r = b1.reshape(1, d)
    b2r = b2.reshape(1, d)

    tb = _pick_batch_tile(b)
    grid = (pl.cdiv(b, tb),)

    out = pl.pallas_call(
        _center_intersection_kernel,
        out_shape=jax.ShapeDtypeStruct((b, d), embeddings.dtype),
        grid=grid,
        in_specs=[
            pl.BlockSpec((n, tb, d), lambda i: (0, i, 0)),   # batch-blocked
            pl.BlockSpec((d, d), lambda i: (0, 0)),          # grid-invariant
            pl.BlockSpec((1, d), lambda i: (0, 0)),
            pl.BlockSpec((d, d), lambda i: (0, 0)),
            pl.BlockSpec((1, d), lambda i: (0, 0)),
        ],
        out_specs=pl.BlockSpec((tb, d), lambda i: (i, 0)),
        compiler_params=pltpu.CompilerParams(
            dimension_semantics=("parallel",)),
    )(embeddings, w1t, b1r, w2t, b2r)

    if squeeze_batch:
        out = out.reshape(d)
    return out


def _ref_forward(embeddings, w1, b1, w2, b2):
    """Pure-JAX reference matching the PyTorch forward exactly."""
    h = jax.nn.relu(
        jnp.matmul(embeddings, w1.T, precision=jax.lax.Precision.HIGHEST) + b1)
    att = jax.nn.softmax(
        jnp.matmul(h, w2.T, precision=jax.lax.Precision.HIGHEST) + b2, axis=0)
    return jnp.sum(att * embeddings, axis=0)


if __name__ == "__main__":
    dim = 32       # embedding size D (self.dim)
    n_conj = 8     # number of embeddings being intersected (softmax dim=0)
    batch = 2      # independent intersections (batched use of the module)

    key = jax.random.PRNGKey(0)
    k_emb, k_embb, k_w1, k_w2, k_b1, k_b2 = jax.random.split(key, 6)

    # Xavier-uniform weights like nn.init.xavier_uniform_; small random biases.
    limit = (6.0 / (dim + dim)) ** 0.5
    w1 = jax.random.uniform(k_w1, (dim, dim), jnp.float32, -limit, limit)
    w2 = jax.random.uniform(k_w2, (dim, dim), jnp.float32, -limit, limit)
    b1 = 0.01 * jax.random.normal(k_b1, (dim,), jnp.float32)
    b2 = 0.01 * jax.random.normal(k_b2, (dim,), jnp.float32)

    # Case 1: plain 2-D forward, embeddings (N, D) -> (D,), as in the module.
    emb2d = jax.random.normal(k_emb, (n_conj, dim), dtype=jnp.float32)
    out2d = jax.block_until_ready(center_intersection(emb2d, w1, b1, w2, b2))
    ref2d = _ref_forward(emb2d, w1, b1, w2, b2)
    assert out2d.shape == (dim,)
    assert jnp.allclose(out2d, ref2d, atol=1e-3, rtol=1e-3)

    # Case 2: batched forward, embeddings (N, B, D) -> (B, D); softmax is
    # still over dim=0, exactly as the PyTorch code computes for 3-D input.
    emb3d = jax.random.normal(k_embb, (n_conj, batch, dim), dtype=jnp.float32)
    out3d = jax.block_until_ready(center_intersection(emb3d, w1, b1, w2, b2))
    ref3d = _ref_forward(emb3d, w1, b1, w2, b2)
    assert out3d.shape == (batch, dim)
    assert jnp.allclose(out3d, ref3d, atol=1e-3, rtol=1e-3)

    print("KERNEL_OK")
</pallas_src>

<mosaic_0001>
module attributes {stable_mosaic.version = 11 : i64} {
  func.func @_center_intersection_kernel(%arg0: i32, %arg1: memref<8x1x32xf32, #tpu.memory_space<vmem>>, %arg2: memref<32x32xf32, #tpu.memory_space<vmem>>, %arg3: memref<1x32xf32, #tpu.memory_space<vmem>>, %arg4: memref<32x32xf32, #tpu.memory_space<vmem>>, %arg5: memref<1x32xf32, #tpu.memory_space<vmem>>, %arg6: memref<1x32xf32, #tpu.memory_space<vmem>>) attributes {dimension_semantics = [#tpu.dimension_semantics<parallel>], iteration_bounds = array<i64: 1>, scalar_prefetch = 0 : i64, scratch_operands = 0 : i64, tpu.core_type = #tpu.core_type<tc>, window_params = [{transform_indices = @transform_0, window_bounds = array<i64: 8, 1, 32>}, {pipeline_mode = #tpu.pipeline_mode<synchronous>, transform_indices = @transform_1, window_bounds = array<i64: 32, 32>}, {pipeline_mode = #tpu.pipeline_mode<synchronous>, transform_indices = @transform_2, window_bounds = array<i64: 1, 32>}, {pipeline_mode = #tpu.pipeline_mode<synchronous>, transform_indices = @transform_3, window_bounds = array<i64: 32, 32>}, {pipeline_mode = #tpu.pipeline_mode<synchronous>, transform_indices = @transform_4, window_bounds = array<i64: 1, 32>}, {transform_indices = @transform_5, window_bounds = array<i64: 1, 32>}]} {
    %c0 = arith.constant 0 : index
    %c0_0 = arith.constant 0 : index
    %0 = vector.load %arg2[%c0, %c0_0] : memref<32x32xf32, #tpu.memory_space<vmem>>, vector<32x32xf32>
    %c0_1 = arith.constant 0 : index
    %c0_2 = arith.constant 0 : index
    %1 = vector.load %arg4[%c0_1, %c0_2] : memref<32x32xf32, #tpu.memory_space<vmem>>, vector<32x32xf32>
    %c0_3 = arith.constant 0 : index
    %c0_4 = arith.constant 0 : index
    %2 = vector.load %arg3[%c0_3, %c0_4] : memref<1x32xf32, #tpu.memory_space<vmem>>, vector<1x32xf32>
    %c0_5 = arith.constant 0 : index
    %c0_6 = arith.constant 0 : index
    %3 = vector.load %arg5[%c0_5, %c0_6] : memref<1x32xf32, #tpu.memory_space<vmem>>, vector<1x32xf32>
    %c0_7 = arith.constant 0 : index
    %c0_8 = arith.constant 0 : index
    %c0_9 = arith.constant 0 : index
    %4 = vector.load %arg1[%c0_7, %c0_8, %c0_9] : memref<8x1x32xf32, #tpu.memory_space<vmem>>, vector<1x1x32xf32>
    %5 = vector.shape_cast %4 : vector<1x1x32xf32> to vector<1x32xf32>
    %c1 = arith.constant 1 : index
    %c0_10 = arith.constant 0 : index
    %c0_11 = arith.constant 0 : index
    %6 = vector.load %arg1[%c1, %c0_10, %c0_11] : memref<8x1x32xf32, #tpu.memory_space<vmem>>, vector<1x1x32xf32>
    %7 = vector.shape_cast %6 : vector<1x1x32xf32> to vector<1x32xf32>
    %c2 = arith.constant 2 : index
    %c0_12 = arith.constant 0 : index
    %c0_13 = arith.constant 0 : index
    %8 = vector.load %arg1[%c2, %c0_12, %c0_13] : memref<8x1x32xf32, #tpu.memory_space<vmem>>, vector<1x1x32xf32>
    %9 = vector.shape_cast %8 : vector<1x1x32xf32> to vector<1x32xf32>
    %c3 = arith.constant 3 : index
    %c0_14 = arith.constant 0 : index
    %c0_15 = arith.constant 0 : index
    %10 = vector.load %arg1[%c3, %c0_14, %c0_15] : memref<8x1x32xf32, #tpu.memory_space<vmem>>, vector<1x1x32xf32>
    %11 = vector.shape_cast %10 : vector<1x1x32xf32> to vector<1x32xf32>
    %c4 = arith.constant 4 : index
    %c0_16 = arith.constant 0 : index
    %c0_17 = arith.constant 0 : index
    %12 = vector.load %arg1[%c4, %c0_16, %c0_17] : memref<8x1x32xf32, #tpu.memory_space<vmem>>, vector<1x1x32xf32>
    %13 = vector.shape_cast %12 : vector<1x1x32xf32> to vector<1x32xf32>
    %c5 = arith.constant 5 : index
    %c0_18 = arith.constant 0 : index
    %c0_19 = arith.constant 0 : index
    %14 = vector.load %arg1[%c5, %c0_18, %c0_19] : memref<8x1x32xf32, #tpu.memory_space<vmem>>, vector<1x1x32xf32>
    %15 = vector.shape_cast %14 : vector<1x1x32xf32> to vector<1x32xf32>
    %c6 = arith.constant 6 : index
    %c0_20 = arith.constant 0 : index
    %c0_21 = arith.constant 0 : index
    %16 = vector.load %arg1[%c6, %c0_20, %c0_21] : memref<8x1x32xf32, #tpu.memory_space<vmem>>, vector<1x1x32xf32>
    %17 = vector.shape_cast %16 : vector<1x1x32xf32> to vector<1x32xf32>
    %c7 = arith.constant 7 : index
    %c0_22 = arith.constant 0 : index
    %c0_23 = arith.constant 0 : index
    %18 = vector.load %arg1[%c7, %c0_22, %c0_23] : memref<8x1x32xf32, #tpu.memory_space<vmem>>, vector<1x1x32xf32>
    %19 = vector.shape_cast %18 : vector<1x1x32xf32> to vector<1x32xf32>
    %cst = arith.constant dense<0.000000e+00> : vector<1x32xf32>
    %20 = tpu.matmul %5, %0, %cst {dimension_numbers = #tpu.dot_dimension_numbers<[1], [0], [0], [1], [0, 0, 1, 1], [], []>, precision = #tpu.contract_precision<fp32>} : vector<1x32xf32>, vector<32x32xf32>, vector<1x32xf32> -> vector<1x32xf32>
    %21 = arith.addf %20, %2 : vector<1x32xf32>
    %cst_24 = arith.constant 0.000000e+00 : f32
    %22 = vector.broadcast %cst_24 : f32 to vector<1x32xf32>
    %23 = arith.maximumf %21, %22 : vector<1x32xf32>
    %cst_25 = arith.constant dense<0.000000e+00> : vector<1x32xf32>
    %24 = tpu.matmul %23, %1, %cst_25 {dimension_numbers = #tpu.dot_dimension_numbers<[1], [0], [0], [1], [0, 0, 1, 1], [], []>, precision = #tpu.contract_precision<fp32>} : vector<1x32xf32>, vector<32x32xf32>, vector<1x32xf32> -> vector<1x32xf32>
    %25 = arith.addf %24, %3 : vector<1x32xf32>
    %cst_26 = arith.constant dense<0.000000e+00> : vector<1x32xf32>
    %26 = tpu.matmul %7, %0, %cst_26 {dimension_numbers = #tpu.dot_dimension_numbers<[1], [0], [0], [1], [0, 0, 1, 1], [], []>, precision = #tpu.contract_precision<fp32>} : vector<1x32xf32>, vector<32x32xf32>, vector<1x32xf32> -> vector<1x32xf32>
    %27 = arith.addf %26, %2 : vector<1x32xf32>
    %cst_27 = arith.constant 0.000000e+00 : f32
    %28 = vector.broadcast %cst_27 : f32 to vector<1x32xf32>
    %29 = arith.maximumf %27, %28 : vector<1x32xf32>
    %cst_28 = arith.constant dense<0.000000e+00> : vector<1x32xf32>
    %30 = tpu.matmul %29, %1, %cst_28 {dimension_numbers = #tpu.dot_dimension_numbers<[1], [0], [0], [1], [0, 0, 1, 1], [], []>, precision = #tpu.contract_precision<fp32>} : vector<1x32xf32>, vector<32x32xf32>, vector<1x32xf32> -> vector<1x32xf32>
    %31 = arith.addf %30, %3 : vector<1x32xf32>
    %cst_29 = arith.constant dense<0.000000e+00> : vector<1x32xf32>
    %32 = tpu.matmul %9, %0, %cst_29 {dimension_numbers = #tpu.dot_dimension_numbers<[1], [0], [0], [1], [0, 0, 1, 1], [], []>, precision = #tpu.contract_precision<fp32>} : vector<1x32xf32>, vector<32x32xf32>, vector<1x32xf32> -> vector<1x32xf32>
    %33 = arith.addf %32, %2 : vector<1x32xf32>
    %cst_30 = arith.constant 0.000000e+00 : f32
    %34 = vector.broadcast %cst_30 : f32 to vector<1x32xf32>
    %35 = arith.maximumf %33, %34 : vector<1x32xf32>
    %cst_31 = arith.constant dense<0.000000e+00> : vector<1x32xf32>
    %36 = tpu.matmul %35, %1, %cst_31 {dimension_numbers = #tpu.dot_dimension_numbers<[1], [0], [0], [1], [0, 0, 1, 1], [], []>, precision = #tpu.contract_precision<fp32>} : vector<1x32xf32>, vector<32x32xf32>, vector<1x32xf32> -> vector<1x32xf32>
    %37 = arith.addf %36, %3 : vector<1x32xf32>
    %cst_32 = arith.constant dense<0.000000e+00> : vector<1x32xf32>
    %38 = tpu.matmul %11, %0, %cst_32 {dimension_numbers = #tpu.dot_dimension_numbers<[1], [0], [0], [1], [0, 0, 1, 1], [], []>, precision = #tpu.contract_precision<fp32>} : vector<1x32xf32>, vector<32x32xf32>, vector<1x32xf32> -> vector<1x32xf32>
    %39 = arith.addf %38, %2 : vector<1x32xf32>
    %cst_33 = arith.constant 0.000000e+00 : f32
    %40 = vector.broadcast %cst_33 : f32 to vector<1x32xf32>
    %41 = arith.maximumf %39, %40 : vector<1x32xf32>
    %cst_34 = arith.constant dense<0.000000e+00> : vector<1x32xf32>
    %42 = tpu.matmul %41, %1, %cst_34 {dimension_numbers = #tpu.dot_dimension_numbers<[1], [0], [0], [1], [0, 0, 1, 1], [], []>, precision = #tpu.contract_precision<fp32>} : vector<1x32xf32>, vector<32x32xf32>, vector<1x32xf32> -> vector<1x32xf32>
    %43 = arith.addf %42, %3 : vector<1x32xf32>
    %cst_35 = arith.constant dense<0.000000e+00> : vector<1x32xf32>
    %44 = tpu.matmul %13, %0, %cst_35 {dimension_numbers = #tpu.dot_dimension_numbers<[1], [0], [0], [1], [0, 0, 1, 1], [], []>, precision = #tpu.contract_precision<fp32>} : vector<1x32xf32>, vector<32x32xf32>, vector<1x32xf32> -> vector<1x32xf32>
    %45 = arith.addf %44, %2 : vector<1x32xf32>
    %cst_36 = arith.constant 0.000000e+00 : f32
    %46 = vector.broadcast %cst_36 : f32 to vector<1x32xf32>
    %47 = arith.maximumf %45, %46 : vector<1x32xf32>
    %cst_37 = arith.constant dense<0.000000e+00> : vector<1x32xf32>
    %48 = tpu.matmul %47, %1, %cst_37 {dimension_numbers = #tpu.dot_dimension_numbers<[1], [0], [0], [1], [0, 0, 1, 1], [], []>, precision = #tpu.contract_precision<fp32>} : vector<1x32xf32>, vector<32x32xf32>, vector<1x32xf32> -> vector<1x32xf32>
    %49 = arith.addf %48, %3 : vector<1x32xf32>
    %cst_38 = arith.constant dense<0.000000e+00> : vector<1x32xf32>
    %50 = tpu.matmul %15, %0, %cst_38 {dimension_numbers = #tpu.dot_dimension_numbers<[1], [0], [0], [1], [0, 0, 1, 1], [], []>, precision = #tpu.contract_precision<fp32>} : vector<1x32xf32>, vector<32x32xf32>, vector<1x32xf32> -> vector<1x32xf32>
    %51 = arith.addf %50, %2 : vector<1x32xf32>
    %cst_39 = arith.constant 0.000000e+00 : f32
    %52 = vector.broadcast %cst_39 : f32 to vector<1x32xf32>
    %53 = arith.maximumf %51, %52 : vector<1x32xf32>
    %cst_40 = arith.constant dense<0.000000e+00> : vector<1x32xf32>
    %54 = tpu.matmul %53, %1, %cst_40 {dimension_numbers = #tpu.dot_dimension_numbers<[1], [0], [0], [1], [0, 0, 1, 1], [], []>, precision = #tpu.contract_precision<fp32>} : vector<1x32xf32>, vector<32x32xf32>, vector<1x32xf32> -> vector<1x32xf32>
    %55 = arith.addf %54, %3 : vector<1x32xf32>
    %cst_41 = arith.constant dense<0.000000e+00> : vector<1x32xf32>
    %56 = tpu.matmul %17, %0, %cst_41 {dimension_numbers = #tpu.dot_dimension_numbers<[1], [0], [0], [1], [0, 0, 1, 1], [], []>, precision = #tpu.contract_precision<fp32>} : vector<1x32xf32>, vector<32x32xf32>, vector<1x32xf32> -> vector<1x32xf32>
    %57 = arith.addf %56, %2 : vector<1x32xf32>
    %cst_42 = arith.constant 0.000000e+00 : f32
    %58 = vector.broadcast %cst_42 : f32 to vector<1x32xf32>
    %59 = arith.maximumf %57, %58 : vector<1x32xf32>
    %cst_43 = arith.constant dense<0.000000e+00> : vector<1x32xf32>
    %60 = tpu.matmul %59, %1, %cst_43 {dimension_numbers = #tpu.dot_dimension_numbers<[1], [0], [0], [1], [0, 0, 1, 1], [], []>, precision = #tpu.contract_precision<fp32>} : vector<1x32xf32>, vector<32x32xf32>, vector<1x32xf32> -> vector<1x32xf32>
    %61 = arith.addf %60, %3 : vector<1x32xf32>
    %cst_44 = arith.constant dense<0.000000e+00> : vector<1x32xf32>
    %62 = tpu.matmul %19, %0, %cst_44 {dimension_numbers = #tpu.dot_dimension_numbers<[1], [0], [0], [1], [0, 0, 1, 1], [], []>, precision = #tpu.contract_precision<fp32>} : vector<1x32xf32>, vector<32x32xf32>, vector<1x32xf32> -> vector<1x32xf32>
    %63 = arith.addf %62, %2 : vector<1x32xf32>
    %cst_45 = arith.constant 0.000000e+00 : f32
    %64 = vector.broadcast %cst_45 : f32 to vector<1x32xf32>
    %65 = arith.maximumf %63, %64 : vector<1x32xf32>
    %cst_46 = arith.constant dense<0.000000e+00> : vector<1x32xf32>
    %66 = tpu.matmul %65, %1, %cst_46 {dimension_numbers = #tpu.dot_dimension_numbers<[1], [0], [0], [1], [0, 0, 1, 1], [], []>, precision = #tpu.contract_precision<fp32>} : vector<1x32xf32>, vector<32x32xf32>, vector<1x32xf32> -> vector<1x32xf32>
    %67 = arith.addf %66, %3 : vector<1x32xf32>
    %68 = arith.maximumf %25, %31 : vector<1x32xf32>
    %69 = arith.maximumf %68, %37 : vector<1x32xf32>
    %70 = arith.maximumf %69, %43 : vector<1x32xf32>
    %71 = arith.maximumf %70, %49 : vector<1x32xf32>
    %72 = arith.maximumf %71, %55 : vector<1x32xf32>
    %73 = arith.maximumf %72, %61 : vector<1x32xf32>
    %74 = arith.maximumf %73, %67 : vector<1x32xf32>
    %75 = arith.subf %25, %74 : vector<1x32xf32>
    %76 = math.exp %75 : vector<1x32xf32>
    %77 = arith.subf %31, %74 : vector<1x32xf32>
    %78 = math.exp %77 : vector<1x32xf32>
    %79 = arith.subf %37, %74 : vector<1x32xf32>
    %80 = math.exp %79 : vector<1x32xf32>
    %81 = arith.subf %43, %74 : vector<1x32xf32>
    %82 = math.exp %81 : vector<1x32xf32>
    %83 = arith.subf %49, %74 : vector<1x32xf32>
    %84 = math.exp %83 : vector<1x32xf32>
    %85 = arith.subf %55, %74 : vector<1x32xf32>
    %86 = math.exp %85 : vector<1x32xf32>
    %87 = arith.subf %61, %74 : vector<1x32xf32>
    %88 = math.exp %87 : vector<1x32xf32>
    %89 = arith.subf %67, %74 : vector<1x32xf32>
    %90 = math.exp %89 : vector<1x32xf32>
    %91 = arith.addf %76, %78 : vector<1x32xf32>
    %92 = arith.addf %91, %80 : vector<1x32xf32>
    %93 = arith.addf %92, %82 : vector<1x32xf32>
    %94 = arith.addf %93, %84 : vector<1x32xf32>
    %95 = arith.addf %94, %86 : vector<1x32xf32>
    %96 = arith.addf %95, %88 : vector<1x32xf32>
    %97 = arith.addf %96, %90 : vector<1x32xf32>
    %98 = tpu.reciprocal %97 : vector<1x32xf32> -> vector<1x32xf32>
    %99 = arith.mulf %76, %98 : vector<1x32xf32>
    %100 = arith.mulf %99, %5 : vector<1x32xf32>
    %101 = arith.mulf %78, %98 : vector<1x32xf32>
    %102 = arith.mulf %101, %7 : vector<1x32xf32>
    %103 = arith.addf %100, %102 : vector<1x32xf32>
    %104 = arith.mulf %80, %98 : vector<1x32xf32>
    %105 = arith.mulf %104, %9 : vector<1x32xf32>
    %106 = arith.addf %103, %105 : vector<1x32xf32>
    %107 = arith.mulf %82, %98 : vector<1x32xf32>
    %108 = arith.mulf %107, %11 : vector<1x32xf32>
    %109 = arith.addf %106, %108 : vector<1x32xf32>
    %110 = arith.mulf %84, %98 : vector<1x32xf32>
    %111 = arith.mulf %110, %13 : vector<1x32xf32>
    %112 = arith.addf %109, %111 : vector<1x32xf32>
    %113 = arith.mulf %86, %98 : vector<1x32xf32>
    %114 = arith.mulf %113, %15 : vector<1x32xf32>
    %115 = arith.addf %112, %114 : vector<1x32xf32>
    %116 = arith.mulf %88, %98 : vector<1x32xf32>
    %117 = arith.mulf %116, %17 : vector<1x32xf32>
    %118 = arith.addf %115, %117 : vector<1x32xf32>
    %119 = arith.mulf %90, %98 : vector<1x32xf32>
    %120 = arith.mulf %119, %19 : vector<1x32xf32>
    %121 = arith.addf %118, %120 : vector<1x32xf32>
    %c0_47 = arith.constant 0 : index
    %c0_48 = arith.constant 0 : index
    %122 = vector.load %arg6[%c0_47, %c0_48] : memref<1x32xf32, #tpu.memory_space<vmem>>, vector<1x32xf32>
    tpu.vector_store %arg6[%c0_47, %c0_48], %121 {strides = array<i32>} : memref<1x32xf32, #tpu.memory_space<vmem>>, vector<1x32xf32>,
    return
  }
  func.func @transform_0(%arg0: i32) -> (i32, i32, i32) {
    %c0_i32 = arith.constant 0 : i32
    %c0_i32_0 = arith.constant 0 : i32
    %c0_i32_1 = arith.constant 0 : i32
    return %c0_i32, %arg0, %c0_i32_0 : i32, i32, i32
  }
  func.func @transform_1(%arg0: i32) -> (i32, i32) {
    %c0_i32 = arith.constant 0 : i32
    %c0_i32_0 = arith.constant 0 : i32
    %c0_i32_1 = arith.constant 0 : i32
    return %c0_i32, %c0_i32_0 : i32, i32
  }
  func.func @transform_2(%arg0: i32) -> (i32, i32) {
    %c0_i32 = arith.constant 0 : i32
    %c0_i32_0 = arith.constant 0 : i32
    %c0_i32_1 = arith.constant 0 : i32
    return %c0_i32, %c0_i32_0 : i32, i32
  }
  func.func @transform_3(%arg0: i32) -> (i32, i32) {
    %c0_i32 = arith.constant 0 : i32
    %c0_i32_0 = arith.constant 0 : i32
    %c0_i32_1 = arith.constant 0 : i32
    return %c0_i32, %c0_i32_0 : i32, i32
  }
  func.func @transform_4(%arg0: i32) -> (i32, i32) {
    %c0_i32 = arith.constant 0 : i32
    %c0_i32_0 = arith.constant 0 : i32
    %c0_i32_1 = arith.constant 0 : i32
    return %c0_i32, %c0_i32_0 : i32, i32
  }
  func.func @transform_5(%arg0: i32) -> (i32, i32) {
    %c0_i32 = arith.constant 0 : i32
    %c0_i32_0 = arith.constant 0 : i32
    return %arg0, %c0_i32 : i32, i32
  }
}

</mosaic_0001>

<bundles_post_ra>
// kernel: tpu_custom_call.1
= control target key start
LH: loop header
LB: loop body
LE: loop exit
PB: predicated region body
PF: predicated region fallthrough
CT: control target
= control target key end

     0   :  { %10 = vsyncpa [#allocation3], 0  ;;  %s11236_s0 = inlined_call_operand.hbm [shape: f32[8,1,32], index: 0, kind: input, shape index: {}]   ;;  %s11237_s1 = inlined_call_operand.hbm [shape: f32[32,32], index: 1, kind: input, shape index: {}]   ;;  %s11238_s2 = inlined_call_operand.vmem [shape: f32[1,32], index: 2, kind: input, shape index: {}]   ;;  %s11239_s3 = inlined_call_operand.hbm [shape: f32[32,32], index: 3, kind: input, shape index: {}]   ;;  %s11240_s4 = inlined_call_operand.vmem [shape: f32[1,32], index: 4, kind: input, shape index: {}]   ;;  %s11241_s5 = inlined_call_operand.hbm [shape: f32[1,32], index: 5, kind: output, shape index: {}]  }
   0x1   :  { %11 = vsyncpa [#allocation6], 0 }
   0x2   :  { %12 = vsyncpa [#allocation4], 0  ;;  %s10402_s18 = smov [#allocation5]   ;;  %s10308_s22 = scalar_lea.hbm %s11237_s1, 512 }
   0x3   :  { %s30_s19 = sshll.u32 %s10402_s18, 4  ;;  %p10309_p0 = scmp.ne.s32.totalorder %s11237_s1, %s10308_s22  ;;  %s31_s19 = int_to_ptr.vmem [resolvable:$true] %s30_s19 }
   0x4   :  { %p10312_p1 = scmp.lt.u32.totalorder %s10308_s22, %s11237_s1 }
   0x6   :  { %p10314_p2 = pnand %p10312_p1, %p10309_p0 }
   0x8   :  { %10317 = shalt.err (!%p10314_p2)
}
   0x9   :  { %s10318_s27 = scalar_lea.vmem %s31_s19, 512  ;;  %p10323_p4 = scmp.lt.s32.totalorder %s31_s19, %s31_s19 }
   0xa   :  { %p10319_p3 = scmp.ne.s32.totalorder %s31_s19, %s10318_s27  ;;  %p10324_p5 = scmp.lt.s32.totalorder %s10318_s27, %s10318_s27 }
   0xc   :  { %p10325_p6 = por %p10324_p5, %p10323_p4 }
   0xe   :  { %p10326_p7 = pnand %p10325_p6, %p10319_p3 }
  0x10   :  { %10329 = shalt.err (!%p10326_p7)
}
  0x11   :  { %s10403_s28 = smov 128   ;;  %s10404_s29 = smov 8  }
  0x12   :  { %36 = dma.hbm_to_vmem [thread:$0]  %s11237_s1, 512, %s31_s19, [#allocation6], %s10403_s28, %s10403_s28, %s10404_s29  }
  0x13   :  { %s10405_s7 = smov [#allocation2]   ;;  %s10330_s11 = scalar_lea.hbm %s11236_s0, 128 }
  0x14   :  { %s18_s8 = sshll.u32 %s10405_s7, 4  ;;  %p10331_p8 = scmp.ne.s32.totalorder %s11236_s0, %s10330_s11  ;;  %s19_s8 = int_to_ptr.vmem [resolvable:$true] %s18_s8 }
  0x15   :  { %p10334_p9 = scmp.lt.u32.totalorder %s10330_s11, %s11236_s0 }
  0x17   :  { %p10336_p10 = pnand %p10334_p9, %p10331_p8 }
  0x19   :  { %10339 = shalt.err (!%p10336_p10)
}
  0x1a   :  { %s10340_s16 = scalar_lea.vmem %s19_s8, 128  ;;  %p10345_p12 = scmp.lt.s32.totalorder %s19_s8, %s19_s8 }
  0x1b   :  { %p10341_p11 = scmp.ne.s32.totalorder %s19_s8, %s10340_s16  ;;  %p10346_p13 = scmp.lt.s32.totalorder %s10340_s16, %s10340_s16 }
  0x1d   :  { %p10347_p0 = por %p10346_p13, %p10345_p12 }
  0x1f   :  { %p10348_p1 = pnand %p10347_p0, %p10341_p11 }
  0x21   :  { %10351 = shalt.err (!%p10348_p1)
}
  0x22   :  { %s10406_s1 = smov 16   ;;  %s10407_s17 = smov 1  }
  0x23   :  { %24 = dma.hbm_to_vmem [thread:$0]  %s11236_s0, 128, %s19_s8, [#allocation3], %s10406_s1, %s10406_s1, %s10407_s17  }
  0x24   :  { %s10408_s20 = smov [#allocation7]   ;;  %s10352_s24 = scalar_lea.hbm %s11239_s3, 512 }
  0x25   :  { %s44_s21 = sshll.u32 %s10408_s20, 4  ;;  %p10353_p2 = scmp.ne.s32.totalorder %s11239_s3, %s10352_s24  ;;  %s45_s21 = int_to_ptr.vmem [resolvable:$true] %s44_s21 }
  0x26   :  { %p10356_p3 = scmp.lt.u32.totalorder %s10352_s24, %s11239_s3 }
  0x28   :  { %p10358_p4 = pnand %p10356_p3, %p10353_p2 }
  0x2a   :  { %10361 = shalt.err (!%p10358_p4)
}
  0x2b   :  { %s10362_s6 = scalar_lea.vmem %s45_s21, 512  ;;  %p10367_p6 = scmp.lt.s32.totalorder %s45_s21, %s45_s21 }
  0x2c   :  { %p10363_p5 = scmp.ne.s32.totalorder %s45_s21, %s10362_s6  ;;  %p10368_p7 = scmp.lt.s32.totalorder %s10362_s6, %s10362_s6 }
  0x2e   :  { %p10369_p8 = por %p10368_p7, %p10367_p6 }
  0x30   :  { %p10370_p9 = pnand %p10369_p8, %p10363_p5 }
  0x32   :  { %10373 = shalt.err (!%p10370_p9)
}
  0x33   :  { %50 = dma.hbm_to_vmem [thread:$0]  %s11239_s3, 512, %s45_s21, [#allocation6], %s10403_s28, %s10403_s28, %s10404_s29  }
  0x34   :  { %10396 = dma.done.wait [#allocation3], 128  }
  0x35   :  { %10397 = vsyncadd [#allocation3], 4294967168 }
  0x36   :  { %10398 = dma.done.wait [#allocation6], 1024  }
  0x37   :  { %10399 = vsyncadd [#allocation6], 4294966272  ;;  %v10409_v0 = vmov 0.0|0.0   ;;  %vm10410_vm0 = vmmov 0   ;;  %v10411_v1 = vmov 0.0   ;;  %vm87_vm1 = vcmask 261120  }
  0x38   :  { %9520 = vmatprep.subr.bf16.mxu0 %v10409_v0  ;;  %8472 = vmatprep.mubr.msk.f32.mxu0 %vm10410_vm0, %v10411_v1  ;;  %v62_v2 = vld [vmem:[#allocation5] sm:$0xff]  ;;  %v63_v3 = vld [vmem:[#allocation5 + $0x8] sm:$0xff]  ;;  %v64_v4 = vld [vmem:[#allocation5 + $0x10] sm:$0xff]  ;;  %vm7966_vm2 = vcmask 253952  }
  0x39   :  { %9556 = vmatprep.subr.bf16.mxu1 %v10409_v0  ;;  %8538 = vmatprep.mubr.msk.f32.mxu1 %vm10410_vm0, %v10411_v1  ;;  %v92_v5 = vand.u32 4294901760, %v62_v2  ;;  %v95_v6 = vand.u32 4294901760, %v63_v3  ;;  %v65_v7 = vld [vmem:[#allocation5 + $0x18] sm:$0xff]  ;;  %v98_v8 = vand.u32 4294901760, %v64_v4  ;;  %v66_v59 = vld [vmem:[#allocation7] sm:$0xff]  ;;  %v67_v60 = vld [vmem:[#allocation7 + $0x8] sm:$0xff] }
  0x3a   :  { %v72_v9 = vld [vmem:[#allocation2] sm:$0x1]  ;;  %v101_v10 = vand.u32 4294901760, %v65_v7  ;;  %v74_v40 = vld [vmem:[#allocation2 + $0x1] sm:$0x1]  ;;  %v581_v61 = vand.u32 4294901760, %v66_v59 }
  0x3b   :  { %v89_v11 = vsel %vm87_vm1, %v72_v9, 0  ;;  %v10492_v12 = vpack.c.bf16 %v95_v6, %v92_v5  ;;  %v172_v14 = vsub.f32 %v62_v2, %v92_v5  ;;  %v179_v15 = vsub.f32 %v63_v3, %v95_v6  ;;  %v76_v48 = vld [vmem:[#allocation2 + $0x2] sm:$0x1]  ;;  %v78_v55 = vld [vmem:[#allocation2 + $0x3] sm:$0x1]  ;;  %v68_v5 = vld [vmem:[#allocation7 + $0x10] sm:$0xff] }
  0x3c   :  { %v10494_v13 = vand.u32 4294901760, %v89_v11  ;;  %v186_v16 = vsub.f32 %v64_v4, %v98_v8  ;;  %v193_v17 = vsub.f32 %v65_v7, %v101_v10  ;;  %v10497_v18 = vpack.c.bf16 %v101_v10, %v98_v8  ;;  %v69_v6 = vld [vmem:[#allocation7 + $0x18] sm:$0xff] }
  0x3d   :  { %9522 = vmatpush3.bf16.msra.mxu0 %v10492_v12  ;;  %v173_v20 = vand.u32 4294901760, %v172_v14  ;;  %v180_v21 = vand.u32 4294901760, %v179_v15  ;;  %v10512_v37 = vpack.c.bf16 %v179_v15, %v172_v14  ;;  %v1066_v42 = vsel %vm87_vm1, %v74_v40, 0 }
  0x3e   :  { %v161_v19 = vsub.f32 %v89_v11, %v10494_v13  ;;  %9523 = vmatprep.subr.bf16.mxu0 %v10409_v0  ;;  %v187_v22 = vand.u32 4294901760, %v186_v16  ;;  %v194_v23 = vand.u32 4294901760, %v193_v17  ;;  %v10517_v38 = vpack.c.bf16 %v193_v17, %v186_v16 }
  0x3f   :  { %v174_v25 = vsub.f32 %v172_v14, %v173_v20  ;;  %v181_v26 = vsub.f32 %v179_v15, %v180_v21  ;;  %v10529_v39 = vpack.c.bf16 %v180_v21, %v173_v20  ;;  %v1137_v43 = vand.u32 4294901760, %v1066_v42 }
  0x40   :  { %v162_v24 = vand.u32 4294901760, %v161_v19  ;;  %v188_v27 = vsub.f32 %v186_v16, %v187_v22  ;;  %v195_v28 = vsub.f32 %v193_v17, %v194_v23  ;;  %v10533_v41 = vpack.c.bf16 %v194_v23, %v187_v22 }
  0x41   :  { %9525 = vmatpush3.bf16.msra.mxu0 %v10497_v18  ;;  %v175_v30 = vand.u32 4294901760, %v174_v25  ;;  %v182_v31 = vand.u32 4294901760, %v181_v26  ;;  %v1138_v44 = vsub.f32 %v1066_v42, %v1137_v43  ;;  %v2043_v49 = vsel %vm87_vm1, %v76_v48, 0 }
  0x42   :  { %v163_v29 = vsub.f32 %v161_v19, %v162_v24  ;;  %9526 = vmatprep.subr.bf16.mxu0 %v10409_v0  ;;  %v189_v32 = vand.u32 4294901760, %v188_v27  ;;  %v196_v33 = vand.u32 4294901760, %v195_v28  ;;  %v10578_v50 = vand.u32 4294901760, %v2043_v49 }
  0x43   :  { %v10503_v35 = vpack.c.bf16 %v182_v31, %v175_v30  ;;  %v1139_v45 = vand.u32 4294901760, %v1138_v44  ;;  %v3020_v56 = vsel %vm87_vm1, %v78_v55, 0  ;;  %v584_v62 = vand.u32 4294901760, %v67_v60 }
  0x44   :  { %v164_v34 = vand.u32 4294901760, %v163_v29  ;;  %v10506_v36 = vpack.c.bf16 %v196_v33, %v189_v32  ;;  %v2115_v51 = vsub.f32 %v2043_v49, %v10578_v50  ;;  %v10619_v57 = vand.u32 4294901760, %v3020_v56 }
  0x45   :  { %v1140_v46 = vsub.f32 %v1138_v44, %v1139_v45  ;;  %v10631_v63 = vpack.c.bf16 %v584_v62, %v581_v61  ;;  %v661_v2 = vsub.f32 %v66_v59, %v581_v61  ;;  %v668_v3 = vsub.f32 %v67_v60, %v584_v62 }
  0x46   :  { %8473 = vmatmul.mubr.f32.vlgmr.msra.gmra.mrb[0].mxu0 %v164_v34  ;;  %v2116_v52 = vand.u32 4294901760, %v2115_v51  ;;  %v10624_v58 = vsub.f32 %v3020_v56, %v10619_v57  ;;  %v587_v7 = vand.u32 4294901760, %v68_v5  ;;  %v590_v8 = vand.u32 4294901760, %v69_v6  ;;  %v80_v34 = vld [vmem:[#allocation2 + $0x4] sm:$0x1] }
  0x47   :  { %9528 = vmatpush3.bf16.msra.mxu0 %v10503_v35  ;;  %8483 = vmatprep.mubr.msk.f32.mxu0 %vm10410_vm0, %v10411_v1  ;;  %v1141_v47 = vand.u32 4294901760, %v1140_v46  ;;  %v662_v9 = vand.u32 4294901760, %v661_v2  ;;  %v669_v10 = vand.u32 4294901760, %v668_v3  ;;  %v10658_v30 = vpack.c.bf16 %v668_v3, %v661_v2 }
  0x48   :  { %9529 = vmatprep.subr.bf16.mxu0 %v10409_v0  ;;  %v2117_v53 = vsub.f32 %v2115_v51, %v2116_v52  ;;  %v3093_v4 = vand.u32 4294901760, %v10624_v58  ;;  %9558 = vmatpush3.bf16.msra.mxu1 %v10631_v63  ;;  %v10638_v11 = vpack.c.bf16 %v590_v8, %v587_v7  ;;  %v675_v15 = vsub.f32 %v68_v5, %v587_v7 }
  0x49   :  { %9559 = vmatprep.subr.bf16.mxu1 %v10409_v0  ;;  %v670_v14 = vsub.f32 %v668_v3, %v669_v10  ;;  %v682_v16 = vsub.f32 %v69_v6, %v590_v8  ;;  %v10676_v32 = vpack.c.bf16 %v669_v10, %v662_v9  ;;  %v3997_v40 = vsel %vm87_vm1, %v80_v34, 0 }
  0x4a   :  { %v2118_v54 = vand.u32 4294901760, %v2117_v53  ;;  %v3094_v17 = vsub.f32 %v10624_v58, %v3093_v4  ;;  %v676_v21 = vand.u32 4294901760, %v675_v15  ;;  %v4068_v42 = vand.u32 4294901760, %v3997_v40 }
  0x4b   :  { %9531 = vmatpush3.bf16.msra.mxu0 %v10506_v36  ;;  %v671_v20 = vand.u32 4294901760, %v670_v14  ;;  %v683_v22 = vand.u32 4294901760, %v682_v16  ;;  %v10661_v31 = vpack.c.bf16 %v682_v16, %v675_v15 }
  0x4c   :  { %9532 = vmatprep.subr.bf16.mxu0 %v10409_v0  ;;  %9561 = vmatpush3.bf16.msra.mxu1 %v10638_v11  ;;  %v3095_v26 = vand.u32 4294901760, %v3094_v17 }
  0x4d   :  { %9562 = vmatprep.subr.bf16.mxu1 %v10409_v0  ;;  %v684_v25 = vsub.f32 %v682_v16, %v683_v22  ;;  %v10679_v33 = vpack.c.bf16 %v683_v22, %v676_v21  ;;  %v10864_v22 = vld [vmem:[#allocation2 + $0x7] sm:$0x1] }
  0x4e   :  { %8484 = vmatmul.mubr.f32.vlgmr.msra.gmra.mrb[0].mxu0 %v10494_v13 }
  0x4f   :  { %9534 = vmatpush3.bf16.msra.mxu0 %v10512_v37  ;;  %8494 = vmatprep.mubr.msk.f32.mxu0 %vm10410_vm0, %v10411_v1  ;;  %v685_v28 = vand.u32 4294901760, %v684_v25 }
  0x50   :  { %9535 = vmatprep.subr.bf16.mxu0 %v10409_v0 }
  0x53   :  { %9537 = vmatpush3.bf16.msra.mxu0 %v10517_v38 }
  0x54   :  { %9538 = vmatprep.subr.bf16.mxu0 %v10409_v0 }
  0x56   :  { %8495 = vmatmul.mubr.f32.vlgmr.msra.gmra.mrb[0].mxu0 %v161_v19 }
  0x57   :  { %9540 = vmatpush3.bf16.msra.mxu0 %v10492_v12  ;;  %8505 = vmatprep.mubr.msk.f32.mxu0 %vm10410_vm0, %v10411_v1 }
  0x58   :  { %9541 = vmatprep.subr.bf16.mxu0 %v10409_v0 }
  0x5b   :  { %9543 = vmatpush3.bf16.msra.mxu0 %v10497_v18 }
  0x5c   :  { %9544 = vmatprep.subr.bf16.mxu0 %v10409_v0 }
  0x5e   :  { %8506 = vmatmul.mubr.f32.vlgmr.msra.gmra.mrb[0].mxu0 %v162_v24  ;;  %v677_v24 = vsub.f32 %v675_v15, %v676_v21 }
  0x5f   :  { %9546 = vmatpush3.bf16.msra.mxu0 %v10529_v39  ;;  %8516 = vmatprep.mubr.msk.f32.mxu0 %vm10410_vm0, %v10411_v1 }
  0x60   :  { %9547 = vmatprep.subr.bf16.mxu0 %v10409_v0  ;;  %v678_v27 = vand.u32 4294901760, %v677_v24 }
  0x62   :  { %v10652_v29 = vpack.c.bf16 %v685_v28, %v678_v27 }
  0x63   :  { %9549 = vmatpush3.bf16.msra.mxu0 %v10533_v41 }
  0x64   :  { %9550 = vmatprep.subr.bf16.mxu0 %v10409_v0 }
  0x66   :  { %8517 = vmatmul.mubr.f32.vlgmr.msra.gmra.mrb[0].mxu0 %v10494_v13 }
  0x67   :  { %9552 = vmatpush3.bf16.msra.mxu0 %v10492_v12  ;;  %8527 = vmatprep.mubr.msk.f32.mxu0 %vm10410_vm0, %v10411_v1 }
  0x68   :  { %9553 = vmatprep.subr.bf16.mxu0 %v10409_v0 }
  0x6b   :  { %9555 = vmatpush3.bf16.msra.mxu0 %v10497_v18 }
  0x6c   :  { %9592 = vmatprep.subr.bf16.mxu0 %v10409_v0 }
  0x6e   :  { %8528 = vmatmul.mubr.f32.vlgmr.msra.gmra.mrb[0].mxu0 %v10494_v13  ;;  %v663_v13 = vsub.f32 %v661_v2, %v662_v9  ;;  %v84_v2 = vld [vmem:[#allocation2 + $0x6] sm:$0x1] }
  0x6f   :  { %9594 = vmatpush3.bf16.msra.mxu0 %v10492_v12  ;;  %8604 = vmatprep.mubr.msk.f32.mxu0 %vm10410_vm0, %v10411_v1  ;;  %v5951_v5 = vsel %vm87_vm1, %v84_v2, 0 }
  0x70   :  { %9595 = vmatprep.subr.bf16.mxu0 %v10409_v0  ;;  %v664_v19 = vand.u32 4294901760, %v663_v13  ;;  %v10780_v6 = vand.u32 4294901760, %v5951_v5 }
  0x72   :  { %v10648_v23 = vpack.c.bf16 %v671_v20, %v664_v19  ;;  %v10788_v7 = vsub.f32 %v5951_v5, %v10780_v6 }
  0x73   :  { %9597 = vmatpush3.bf16.msra.mxu0 %v10497_v18 }
  0x74   :  { %9598 = vmatprep.subr.bf16.mxu0 %v10409_v0  ;;  %v6024_v8 = vand.u32 4294901760, %v10788_v7 }
  0x76   :  { %8605 = vmatmul.mubr.f32.vlgmr.msra.gmra.mrb[2].mxu0 %v1141_v47  ;;  %v82_v47 = vld [vmem:[#allocation2 + $0x5] sm:$0x1]  ;;  %v6025_v9 = vsub.f32 %v10788_v7, %v6024_v8 }
  0x77   :  { %9600 = vmatpush3.bf16.msra.mxu0 %v10503_v35  ;;  %8615 = vmatprep.mubr.msk.f32.mxu0 %vm10410_vm0, %v10411_v1  ;;  %v4974_v48 = vsel %vm87_vm1, %v82_v47, 0 }
  0x78   :  { %9601 = vmatprep.subr.bf16.mxu0 %v10409_v0  ;;  %v10726_v49 = vand.u32 4294901760, %v4974_v48  ;;  %v6026_v10 = vand.u32 4294901760, %v6025_v9 }
  0x7b   :  { %9603 = vmatpush3.bf16.msra.mxu0 %v10506_v36 }
  0x7c   :  { %9604 = vmatprep.subr.bf16.mxu0 %v10409_v0 }
  0x7e   :  { %8616 = vmatmul.mubr.f32.vlgmr.msra.gmra.mrb[2].mxu0 %v1137_v43 }
  0x7f   :  { %9606 = vmatpush3.bf16.msra.mxu0 %v10512_v37  ;;  %8626 = vmatprep.mubr.msk.f32.mxu0 %vm10410_vm0, %v10411_v1 }
  0x80   :  { %9607 = vmatprep.subr.bf16.mxu0 %v10409_v0 }
  0x83   :  { %9609 = vmatpush3.bf16.msra.mxu0 %v10517_v38 }
  0x84   :  { %9610 = vmatprep.subr.bf16.mxu0 %v10409_v0 }
  0x86   :  { %8627 = vmatmul.mubr.f32.vlgmr.msra.gmra.mrb[2].mxu0 %v1138_v44 }
  0x87   :  { %9612 = vmatpush3.bf16.msra.mxu0 %v10492_v12  ;;  %8637 = vmatprep.mubr.msk.f32.mxu0 %vm10410_vm0, %v10411_v1 }
  0x88   :  { %9613 = vmatprep.subr.bf16.mxu0 %v10409_v0 }
  0x8b   :  { %9615 = vmatpush3.bf16.msra.mxu0 %v10497_v18 }
  0x8c   :  { %9616 = vmatprep.subr.bf16.mxu0 %v10409_v0 }
  0x8e   :  { %8638 = vmatmul.mubr.f32.vlgmr.msra.gmra.mrb[2].mxu0 %v1139_v45 }
  0x8f   :  { %9618 = vmatpush3.bf16.msra.mxu0 %v10529_v39  ;;  %8648 = vmatprep.mubr.msk.f32.mxu0 %vm10410_vm0, %v10411_v1 }
  0x90   :  { %9619 = vmatprep.subr.bf16.mxu0 %v10409_v0 }
  0x93   :  { %9621 = vmatpush3.bf16.msra.mxu0 %v10533_v41 }
  0x94   :  { %9622 = vmatprep.subr.bf16.mxu0 %v10409_v0 }
  0x96   :  { %8649 = vmatmul.mubr.f32.vlgmr.msra.gmra.mrb[2].mxu0 %v1137_v43 }
  0x97   :  { %9624 = vmatpush3.bf16.msra.mxu0 %v10492_v12  ;;  %8659 = vmatprep.mubr.msk.f32.mxu0 %vm10410_vm0, %v10411_v1 }
  0x98   :  { %9625 = vmatprep.subr.bf16.mxu0 %v10409_v0 }
  0x9b   :  { %9627 = vmatpush3.bf16.msra.mxu0 %v10497_v18 }
  0x9c   :  { %9664 = vmatprep.subr.bf16.mxu0 %v10409_v0 }
  0x9e   :  { %8660 = vmatmul.mubr.f32.vlgmr.msra.gmra.mrb[2].mxu0 %v1137_v43  ;;  %v4069_v43 = vsub.f32 %v3997_v40, %v4068_v42 }
  0x9f   :  { %9666 = vmatpush3.bf16.msra.mxu0 %v10492_v12  ;;  %8736 = vmatprep.mubr.msk.f32.mxu0 %vm10410_vm0, %v10411_v1 }
  0xa0   :  { %9667 = vmatprep.subr.bf16.mxu0 %v10409_v0  ;;  %v4070_v44 = vand.u32 4294901760, %v4069_v43 }
  0xa2   :  { %v4071_v45 = vsub.f32 %v4069_v43, %v4070_v44 }
  0xa3   :  { %9669 = vmatpush3.bf16.msra.mxu0 %v10497_v18 }
  0xa4   :  { %9670 = vmatprep.subr.bf16.mxu0 %v10409_v0  ;;  %v4072_v46 = vand.u32 4294901760, %v4071_v45 }
  0xa6   :  { %8737 = vmatmul.mubr.f32.vlgmr.msra.gmra.mrb[4].mxu0 %v2118_v54  ;;  %v10754_v54 = vld [vmem:[%s11238_s2] sm:$0x1] }
  0xa7   :  { %9672 = vmatpush3.bf16.msra.mxu0 %v10503_v35  ;;  %8747 = vmatprep.mubr.msk.f32.mxu0 %vm10410_vm0, %v10411_v1 }
  0xa8   :  { %9673 = vmatprep.subr.bf16.mxu0 %v10409_v0 }
  0xab   :  { %9675 = vmatpush3.bf16.msra.mxu0 %v10506_v36 }
  0xac   :  { %9676 = vmatprep.subr.bf16.mxu0 %v10409_v0 }
  0xae   :  { %8748 = vmatmul.mubr.f32.vlgmr.msra.gmra.mrb[4].mxu0 %v10578_v50 }
  0xaf   :  { %9678 = vmatpush3.bf16.msra.mxu0 %v10512_v37  ;;  %8758 = vmatprep.mubr.msk.f32.mxu0 %vm10410_vm0, %v10411_v1 }
  0xb0   :  { %9679 = vmatprep.subr.bf16.mxu0 %v10409_v0 }
  0xb3   :  { %9681 = vmatpush3.bf16.msra.mxu0 %v10517_v38 }
  0xb4   :  { %9682 = vmatprep.subr.bf16.mxu0 %v10409_v0 }
  0xb6   :  { %8759 = vmatmul.mubr.f32.vlgmr.msra.gmra.mrb[4].mxu0 %v2115_v51 }
  0xb7   :  { %9684 = vmatpush3.bf16.msra.mxu0 %v10492_v12  ;;  %8769 = vmatprep.mubr.msk.f32.mxu0 %vm10410_vm0, %v10411_v1 }
  0xb8   :  { %9685 = vmatprep.subr.bf16.mxu0 %v10409_v0 }
  0xbb   :  { %9687 = vmatpush3.bf16.msra.mxu0 %v10497_v18 }
  0xbc   :  { %9688 = vmatprep.subr.bf16.mxu0 %v10409_v0 }
  0xbe   :  { %8770 = vmatmul.mubr.f32.vlgmr.msra.gmra.mrb[4].mxu0 %v2116_v52 }
  0xbf   :  { %9690 = vmatpush3.bf16.msra.mxu0 %v10529_v39  ;;  %8780 = vmatprep.mubr.msk.f32.mxu0 %vm10410_vm0, %v10411_v1 }
  0xc0   :  { %9691 = vmatprep.subr.bf16.mxu0 %v10409_v0 }
  0xc3   :  { %9693 = vmatpush3.bf16.msra.mxu0 %v10533_v41 }
  0xc4   :  { %9694 = vmatprep.subr.bf16.mxu0 %v10409_v0 }
  0xc6   :  { %8781 = vmatmul.mubr.f32.vlgmr.msra.gmra.mrb[4].mxu0 %v10578_v50 }
  0xc7   :  { %9696 = vmatpush3.bf16.msra.mxu0 %v10492_v12  ;;  %8791 = vmatprep.mubr.msk.f32.mxu0 %vm10410_vm0, %v10411_v1 }
  0xc8   :  { %9697 = vmatprep.subr.bf16.mxu0 %v10409_v0 }
  0xcb   :  { %9699 = vmatpush3.bf16.msra.mxu0 %v10497_v18 }
  0xcc   :  { %9736 = vmatprep.subr.bf16.mxu0 %v10409_v0 }
  0xce   :  { %8792 = vmatmul.mubr.f32.vlgmr.msra.gmra.mrb[4].mxu0 %v10578_v50  ;;  %v5046_v50 = vsub.f32 %v4974_v48, %v10726_v49 }
  0xcf   :  { %9738 = vmatpush3.bf16.msra.mxu0 %v10492_v12  ;;  %8868 = vmatprep.mubr.msk.f32.mxu0 %vm10410_vm0, %v10411_v1 }
  0xd0   :  { %9739 = vmatprep.subr.bf16.mxu0 %v10409_v0  ;;  %v5047_v51 = vand.u32 4294901760, %v5046_v50 }
  0xd2   :  { %v5048_v52 = vsub.f32 %v5046_v50, %v5047_v51 }
  0xd3   :  { %9741 = vmatpush3.bf16.msra.mxu0 %v10497_v18 }
  0xd4   :  { %9742 = vmatprep.subr.bf16.mxu0 %v10409_v0  ;;  %v5049_v53 = vand.u32 4294901760, %v5048_v52 }
  0xd6   :  { %8869 = vmatmul.mubr.f32.vlgmr.msra.gmra.mrb[6].mxu0 %v3095_v26  ;;  %v6928_v26 = vsel %vm87_vm1, %v10864_v22, 0 }
  0xd7   :  { %9744 = vmatpush3.bf16.msra.mxu0 %v10503_v35  ;;  %8879 = vmatprep.mubr.msk.f32.mxu0 %vm10410_vm0, %v10411_v1  ;;  %v10879_v27 = vand.u32 4294901760, %v6928_v26 }
  0xd8   :  { %9745 = vmatprep.subr.bf16.mxu0 %v10409_v0 }
  0xd9   :  { %v10887_v28 = vsub.f32 %v6928_v26, %v10879_v27 }
  0xdb   :  { %9747 = vmatpush3.bf16.msra.mxu0 %v10506_v36  ;;  %v7001_v34 = vand.u32 4294901760, %v10887_v28 }
  0xdc   :  { %9748 = vmatprep.subr.bf16.mxu0 %v10409_v0 }
  0xdd   :  { %v7002_v40 = vsub.f32 %v10887_v28, %v7001_v34 }
  0xde   :  { %8880 = vmatmul.mubr.f32.vlgmr.msra.gmra.mrb[6].mxu0 %v10619_v57 }
  0xdf   :  { %9750 = vmatpush3.bf16.msra.mxu0 %v10512_v37  ;;  %8890 = vmatprep.mubr.msk.f32.mxu0 %vm10410_vm0, %v10411_v1 }
  0xe0   :  { %9751 = vmatprep.subr.bf16.mxu0 %v10409_v0 }
  0xe3   :  { %9753 = vmatpush3.bf16.msra.mxu0 %v10517_v38 }
  0xe4   :  { %9754 = vmatprep.subr.bf16.mxu0 %v10409_v0 }
  0xe6   :  { %8891 = vmatmul.mubr.f32.vlgmr.msra.gmra.mrb[6].mxu0 %v10624_v58 }
  0xe7   :  { %9756 = vmatpush3.bf16.msra.mxu0 %v10492_v12  ;;  %8901 = vmatprep.mubr.msk.f32.mxu0 %vm10410_vm0, %v10411_v1 }
  0xe8   :  { %9757 = vmatprep.subr.bf16.mxu0 %v10409_v0 }
  0xeb   :  { %9759 = vmatpush3.bf16.msra.mxu0 %v10497_v18 }
  0xec   :  { %9760 = vmatprep.subr.bf16.mxu0 %v10409_v0 }
  0xee   :  { %8902 = vmatmul.mubr.f32.vlgmr.msra.gmra.mrb[6].mxu0 %v3093_v4 }
  0xef   :  { %9762 = vmatpush3.bf16.msra.mxu0 %v10529_v39  ;;  %8912 = vmatprep.mubr.msk.f32.mxu0 %vm10410_vm0, %v10411_v1 }
  0xf0   :  { %9763 = vmatprep.subr.bf16.mxu0 %v10409_v0 }
  0xf3   :  { %9765 = vmatpush3.bf16.msra.mxu0 %v10533_v41 }
  0xf4   :  { %9766 = vmatprep.subr.bf16.mxu0 %v10409_v0 }
  0xf6   :  { %8913 = vmatmul.mubr.f32.vlgmr.msra.gmra.mrb[6].mxu0 %v10619_v57 }
  0xf7   :  { %9768 = vmatpush3.bf16.msra.mxu0 %v10492_v12  ;;  %8923 = vmatprep.mubr.msk.f32.mxu0 %vm10410_vm0, %v10411_v1 }
  0xf8   :  { %9769 = vmatprep.subr.bf16.mxu0 %v10409_v0 }
  0xfb   :  { %9771 = vmatpush3.bf16.msra.mxu0 %v10497_v18 }
  0xfc   :  { %9808 = vmatprep.subr.bf16.mxu0 %v10409_v0 }
  0xfe   :  { %8924 = vmatmul.mubr.f32.vlgmr.msra.gmra.mrb[6].mxu0 %v10619_v57 }
  0xff   :  { %9810 = vmatpush3.bf16.msra.mxu0 %v10492_v12  ;;  %9000 = vmatprep.mubr.msk.f32.mxu0 %vm10410_vm0, %v10411_v1 }
 0x100   :  { %9811 = vmatprep.subr.bf16.mxu0 %v10409_v0 }
 0x103   :  { %9813 = vmatpush3.bf16.msra.mxu0 %v10497_v18 }
 0x104   :  { %9814 = vmatprep.subr.bf16.mxu0 %v10409_v0 }
 0x106   :  { %9001 = vmatmul.mubr.f32.vlgmr.msra.gmra.mrb[8].mxu0 %v4072_v46 }
 0x107   :  { %9816 = vmatpush3.bf16.msra.mxu0 %v10503_v35  ;;  %9011 = vmatprep.mubr.msk.f32.mxu0 %vm10410_vm0, %v10411_v1 }
 0x108   :  { %9817 = vmatprep.subr.bf16.mxu0 %v10409_v0 }
 0x10b   :  { %9819 = vmatpush3.bf16.msra.mxu0 %v10506_v36 }
 0x10c   :  { %9820 = vmatprep.subr.bf16.mxu0 %v10409_v0 }
 0x10e   :  { %9012 = vmatmul.mubr.f32.vlgmr.msra.gmra.mrb[8].mxu0 %v4068_v42 }
 0x10f   :  { %9822 = vmatpush3.bf16.msra.mxu0 %v10512_v37  ;;  %9022 = vmatprep.mubr.msk.f32.mxu0 %vm10410_vm0, %v10411_v1 }
 0x110   :  { %9823 = vmatprep.subr.bf16.mxu0 %v10409_v0 }
 0x113   :  { %9825 = vmatpush3.bf16.msra.mxu0 %v10517_v38 }
 0x114   :  { %9826 = vmatprep.subr.bf16.mxu0 %v10409_v0 }
 0x116   :  { %9023 = vmatmul.mubr.f32.vlgmr.msra.gmra.mrb[8].mxu0 %v4069_v43 }
 0x117   :  { %9828 = vmatpush3.bf16.msra.mxu0 %v10492_v12  ;;  %9033 = vmatprep.mubr.msk.f32.mxu0 %vm10410_vm0, %v10411_v1 }
 0x118   :  { %9829 = vmatprep.subr.bf16.mxu0 %v10409_v0 }
 0x11b   :  { %9831 = vmatpush3.bf16.msra.mxu0 %v10497_v18 }
 0x11c   :  { %9832 = vmatprep.subr.bf16.mxu0 %v10409_v0 }
 0x11e   :  { %9034 = vmatmul.mubr.f32.vlgmr.msra.gmra.mrb[8].mxu0 %v4070_v44 }
 0x11f   :  { %9834 = vmatpush3.bf16.msra.mxu0 %v10529_v39  ;;  %9044 = vmatprep.mubr.msk.f32.mxu0 %vm10410_vm0, %v10411_v1 }
 0x120   :  { %9835 = vmatprep.subr.bf16.mxu0 %v10409_v0 }
 0x123   :  { %9837 = vmatpush3.bf16.msra.mxu0 %v10533_v41 }
 0x124   :  { %9838 = vmatprep.subr.bf16.mxu0 %v10409_v0 }
 0x126   :  { %9045 = vmatmul.mubr.f32.vlgmr.msra.gmra.mrb[8].mxu0 %v4068_v42 }
 0x127   :  { %9840 = vmatpush3.bf16.msra.mxu0 %v10492_v12  ;;  %9055 = vmatprep.mubr.msk.f32.mxu0 %vm10410_vm0, %v10411_v1 }
 0x128   :  { %9841 = vmatprep.subr.bf16.mxu0 %v10409_v0 }
 0x12b   :  { %9843 = vmatpush3.bf16.msra.mxu0 %v10497_v18 }
 0x12c   :  { %9880 = vmatprep.subr.bf16.mxu0 %v10409_v0 }
 0x12e   :  { %9056 = vmatmul.mubr.f32.vlgmr.msra.gmra.mrb[8].mxu0 %v4068_v42  ;;  %v7003_v42 = vand.u32 4294901760, %v7002_v40 }
 0x12f   :  { %9882 = vmatpush3.bf16.msra.mxu0 %v10492_v12  ;;  %9132 = vmatprep.mubr.msk.f32.mxu0 %vm10410_vm0, %v10411_v1 }
 0x130   :  { %9883 = vmatprep.subr.bf16.mxu0 %v10409_v0 }
 0x133   :  { %9885 = vmatpush3.bf16.msra.mxu0 %v10497_v18 }
 0x134   :  { %9886 = vmatprep.subr.bf16.mxu0 %v10409_v0 }
 0x136   :  { %9133 = vmatmul.mubr.f32.vlgmr.msra.gmra.mrb[10].mxu0 %v5049_v53 }
 0x137   :  { %9888 = vmatpush3.bf16.msra.mxu0 %v10503_v35  ;;  %9143 = vmatprep.mubr.msk.f32.mxu0 %vm10410_vm0, %v10411_v1 }
 0x138   :  { %9889 = vmatprep.subr.bf16.mxu0 %v10409_v0 }
 0x13b   :  { %9891 = vmatpush3.bf16.msra.mxu0 %v10506_v36 }
 0x13c   :  { %9892 = vmatprep.subr.bf16.mxu0 %v10409_v0 }
 0x13e   :  { %9144 = vmatmul.mubr.f32.vlgmr.msra.gmra.mrb[10].mxu0 %v10726_v49 }
 0x13f   :  { %9894 = vmatpush3.bf16.msra.mxu0 %v10512_v37  ;;  %9154 = vmatprep.mubr.msk.f32.mxu0 %vm10410_vm0, %v10411_v1 }
 0x140   :  { %9895 = vmatprep.subr.bf16.mxu0 %v10409_v0 }
 0x141   :  { %v572_v55 = vpop.f32.mrb[0].mxu0 }
 0x142   :  { %v10096_v56 = vadd.f32 %v572_v55, %v10754_v54  ;;  %v8529_v57 = vpop.f32.mrb[1].mxu0 }
 0x143   :  { %9897 = vmatpush3.bf16.msra.mxu0 %v10517_v38 }
 0x144   :  { %v576_v58 = vmax.f32 %v10096_v56, 0.0  ;;  %9898 = vmatprep.subr.bf16.mxu0 %v10409_v0 }
 0x146   :  { %v578_v59 = vsel %vm87_vm1, %v576_v58, 0  ;;  %9155 = vmatmul.mubr.f32.vlgmr.msra.gmra.mrb[10].mxu0 %v5046_v50 }
 0x147   :  { %v10763_v60 = vand.u32 4294901760, %v578_v59  ;;  %9900 = vmatpush3.bf16.msra.mxu0 %v10492_v12  ;;  %9165 = vmatprep.mubr.msk.f32.mxu0 %vm10410_vm0, %v10411_v1 }
 0x148   :  { %9901 = vmatprep.subr.bf16.mxu0 %v10409_v0 }
 0x149   :  { %v650_v61 = vsub.f32 %v578_v59, %v10763_v60 }
 0x14b   :  { %9903 = vmatpush3.bf16.msra.mxu0 %v10497_v18  ;;  %v651_v62 = vand.u32 4294901760, %v650_v61 }
 0x14c   :  { %9904 = vmatprep.subr.bf16.mxu0 %v10409_v0 }
 0x14d   :  { %v652_v3 = vsub.f32 %v650_v61, %v651_v62 }
 0x14e   :  { %9166 = vmatmul.mubr.f32.vlgmr.msra.gmra.mrb[10].mxu0 %v5047_v51 }
 0x14f   :  { %9906 = vmatpush3.bf16.msra.mxu0 %v10529_v39  ;;  %v653_v4 = vand.u32 4294901760, %v652_v3  ;;  %9176 = vmatprep.mubr.msk.f32.mxu0 %vm10410_vm0, %v10411_v1 }
 0x150   :  { %9907 = vmatprep.subr.bf16.mxu0 %v10409_v0 }
 0x151   :  { %8539 = vmatmul.mubr.f32.vlgmr.msra.gmra.mrb[0].mxu1 %v653_v4 }
 0x152   :  { %9564 = vmatpush3.bf16.msra.mxu1 %v10648_v23  ;;  %8549 = vmatprep.mubr.msk.f32.mxu1 %vm10410_vm0, %v10411_v1 }
 0x153   :  { %9909 = vmatpush3.bf16.msra.mxu0 %v10533_v41  ;;  %9565 = vmatprep.subr.bf16.mxu1 %v10409_v0 }
 0x154   :  { %9910 = vmatprep.subr.bf16.mxu0 %v10409_v0 }
 0x156   :  { %9567 = vmatpush3.bf16.msra.mxu1 %v10652_v29  ;;  %9177 = vmatmul.mubr.f32.vlgmr.msra.gmra.mrb[10].mxu0 %v10726_v49 }
 0x157   :  { %9912 = vmatpush3.bf16.msra.mxu0 %v10492_v12  ;;  %9568 = vmatprep.subr.bf16.mxu1 %v10409_v0 }
 0x158   :  { %9913 = vmatprep.subr.bf16.mxu0 %v10409_v0  ;;  %9187 = vmatprep.mubr.msk.f32.mxu0 %vm10410_vm0, %v10411_v1 }
 0x159   :  { %8550 = vmatmul.mubr.f32.vlgmr.msra.gmra.mrb[0].mxu1 %v10763_v60 }
 0x15a   :  { %9570 = vmatpush3.bf16.msra.mxu1 %v10658_v30  ;;  %8560 = vmatprep.mubr.msk.f32.mxu1 %vm10410_vm0, %v10411_v1 }
 0x15b   :  { %9915 = vmatpush3.bf16.msra.mxu0 %v10497_v18  ;;  %9571 = vmatprep.subr.bf16.mxu1 %v10409_v0 }
 0x15c   :  { %9952 = vmatprep.subr.bf16.mxu0 %v10409_v0 }
 0x15e   :  { %9573 = vmatpush3.bf16.msra.mxu1 %v10661_v31  ;;  %9188 = vmatmul.mubr.f32.vlgmr.msra.gmra.mrb[10].mxu0 %v10726_v49 }
 0x15f   :  { %9954 = vmatpush3.bf16.msra.mxu0 %v10492_v12  ;;  %9574 = vmatprep.subr.bf16.mxu1 %v10409_v0 }
 0x160   :  { %9955 = vmatprep.subr.bf16.mxu0 %v10409_v0  ;;  %9264 = vmatprep.mubr.msk.f32.mxu0 %vm10410_vm0, %v10411_v1 }
 0x161   :  { %8561 = vmatmul.mubr.f32.vlgmr.msra.gmra.mrb[0].mxu1 %v650_v61 }
 0x162   :  { %9576 = vmatpush3.bf16.msra.mxu1 %v10631_v63  ;;  %8571 = vmatprep.mubr.msk.f32.mxu1 %vm10410_vm0, %v10411_v1 }
 0x163   :  { %9957 = vmatpush3.bf16.msra.mxu0 %v10497_v18  ;;  %9577 = vmatprep.subr.bf16.mxu1 %v10409_v0 }
 0x164   :  { %9958 = vmatprep.subr.bf16.mxu0 %v10409_v0 }
 0x166   :  { %9579 = vmatpush3.bf16.msra.mxu1 %v10638_v11  ;;  %9265 = vmatmul.mubr.f32.vlgmr.msra.gmra.mrb[12].mxu0 %v6026_v10 }
 0x167   :  { %9960 = vmatpush3.bf16.msra.mxu0 %v10503_v35  ;;  %9580 = vmatprep.subr.bf16.mxu1 %v10409_v0 }
 0x168   :  { %9961 = vmatprep.subr.bf16.mxu0 %v10409_v0  ;;  %9275 = vmatprep.mubr.msk.f32.mxu0 %vm10410_vm0, %v10411_v1 }
 0x169   :  { %8572 = vmatmul.mubr.f32.vlgmr.msra.gmra.mrb[0].mxu1 %v651_v62 }
 0x16a   :  { %9582 = vmatpush3.bf16.msra.mxu1 %v10676_v32  ;;  %8582 = vmatprep.mubr.msk.f32.mxu1 %vm10410_vm0, %v10411_v1 }
 0x16b   :  { %9963 = vmatpush3.bf16.msra.mxu0 %v10506_v36  ;;  %9583 = vmatprep.subr.bf16.mxu1 %v10409_v0 }
 0x16c   :  { %9964 = vmatprep.subr.bf16.mxu0 %v10409_v0 }
 0x16e   :  { %9585 = vmatpush3.bf16.msra.mxu1 %v10679_v33  ;;  %9276 = vmatmul.mubr.f32.vlgmr.msra.gmra.mrb[12].mxu0 %v10780_v6 }
 0x16f   :  { %9966 = vmatpush3.bf16.msra.mxu0 %v10512_v37  ;;  %9586 = vmatprep.subr.bf16.mxu1 %v10409_v0 }
 0x170   :  { %9967 = vmatprep.subr.bf16.mxu0 %v10409_v0  ;;  %9286 = vmatprep.mubr.msk.f32.mxu0 %vm10410_vm0, %v10411_v1 }
 0x171   :  { %8583 = vmatmul.mubr.f32.vlgmr.msra.gmra.mrb[0].mxu1 %v10763_v60  ;;  %v1549_v13 = vpop.f32.mrb[2].mxu0 }
 0x172   :  { %v10098_v14 = vadd.f32 %v1549_v13, %v10754_v54  ;;  %9588 = vmatpush3.bf16.msra.mxu1 %v10631_v63  ;;  %v8661_v15 = vpop.f32.mrb[3].mxu0  ;;  %8593 = vmatprep.mubr.msk.f32.mxu1 %vm10410_vm0, %v10411_v1 }
 0x173   :  { %9969 = vmatpush3.bf16.msra.mxu0 %v10517_v38  ;;  %9589 = vmatprep.subr.bf16.mxu1 %v10409_v0 }
 0x174   :  { %v1553_v16 = vmax.f32 %v10098_v14, 0.0  ;;  %9970 = vmatprep.subr.bf16.mxu0 %v10409_v0 }
 0x176   :  { %v1555_v17 = vsel %vm87_vm1, %v1553_v16, 0  ;;  %9591 = vmatpush3.bf16.msra.mxu1 %v10638_v11  ;;  %9287 = vmatmul.mubr.f32.vlgmr.msra.gmra.mrb[12].mxu0 %v10788_v7 }
 0x177   :  { %v10849_v19 = vand.u32 4294901760, %v1555_v17  ;;  %9972 = vmatpush3.bf16.msra.mxu0 %v10492_v12  ;;  %9628 = vmatprep.subr.bf16.mxu1 %v10409_v0 }
 0x178   :  { %9973 = vmatprep.subr.bf16.mxu0 %v10409_v0  ;;  %9297 = vmatprep.mubr.msk.f32.mxu0 %vm10410_vm0, %v10411_v1 }
 0x179   :  { %v1627_v20 = vsub.f32 %v1555_v17, %v10849_v19  ;;  %8594 = vmatmul.mubr.f32.vlgmr.msra.gmra.mrb[0].mxu1 %v10763_v60 }
 0x17a   :  { %9630 = vmatpush3.bf16.msra.mxu1 %v10631_v63  ;;  %8670 = vmatprep.mubr.msk.f32.mxu1 %vm10410_vm0, %v10411_v1 }
 0x17b   :  { %v1628_v21 = vand.u32 4294901760, %v1627_v20  ;;  %9975 = vmatpush3.bf16.msra.mxu0 %v10497_v18  ;;  %9631 = vmatprep.subr.bf16.mxu1 %v10409_v0 }
 0x17c   :  { %9976 = vmatprep.subr.bf16.mxu0 %v10409_v0 }
 0x17d   :  { %v1629_v24 = vsub.f32 %v1627_v20, %v1628_v21 }
 0x17e   :  { %9633 = vmatpush3.bf16.msra.mxu1 %v10638_v11  ;;  %9298 = vmatmul.mubr.f32.vlgmr.msra.gmra.mrb[12].mxu0 %v6024_v8 }
 0x17f   :  { %9978 = vmatpush3.bf16.msra.mxu0 %v10529_v39  ;;  %v1630_v25 = vand.u32 4294901760, %v1629_v24  ;;  %9634 = vmatprep.subr.bf16.mxu1 %v10409_v0 }
 0x180   :  { %9979 = vmatprep.subr.bf16.mxu0 %v10409_v0  ;;  %9308 = vmatprep.mubr.msk.f32.mxu0 %vm10410_vm0, %v10411_v1 }
 0x181   :  { %8671 = vmatmul.mubr.f32.vlgmr.msra.gmra.mrb[2].mxu1 %v1630_v25 }
 0x182   :  { %9636 = vmatpush3.bf16.msra.mxu1 %v10648_v23  ;;  %8681 = vmatprep.mubr.msk.f32.mxu1 %vm10410_vm0, %v10411_v1 }
 0x183   :  { %9981 = vmatpush3.bf16.msra.mxu0 %v10533_v41  ;;  %9637 = vmatprep.subr.bf16.mxu1 %v10409_v0 }
 0x184   :  { %9982 = vmatprep.subr.bf16.mxu0 %v10409_v0 }
 0x186   :  { %9639 = vmatpush3.bf16.msra.mxu1 %v10652_v29  ;;  %9309 = vmatmul.mubr.f32.vlgmr.msra.gmra.mrb[12].mxu0 %v10780_v6 }
 0x187   :  { %9984 = vmatpush3.bf16.msra.mxu0 %v10492_v12  ;;  %9640 = vmatprep.subr.bf16.mxu1 %v10409_v0 }
 0x188   :  { %9985 = vmatprep.subr.bf16.mxu0 %v10409_v0  ;;  %9319 = vmatprep.mubr.msk.f32.mxu0 %vm10410_vm0, %v10411_v1 }
 0x189   :  { %8682 = vmatmul.mubr.f32.vlgmr.msra.gmra.mrb[2].mxu1 %v10849_v19 }
 0x18a   :  { %9642 = vmatpush3.bf16.msra.mxu1 %v10658_v30  ;;  %8692 = vmatprep.mubr.msk.f32.mxu1 %vm10410_vm0, %v10411_v1 }
 0x18b   :  { %9987 = vmatpush3.bf16.msra.mxu0 %v10497_v18  ;;  %9643 = vmatprep.subr.bf16.mxu1 %v10409_v0 }
 0x18c   :  { %10024 = vmatprep.subr.bf16.mxu0 %v10409_v0 }
 0x18e   :  { %9645 = vmatpush3.bf16.msra.mxu1 %v10661_v31  ;;  %9320 = vmatmul.mubr.f32.vlgmr.msra.gmra.mrb[12].mxu0 %v10780_v6 }
 0x18f   :  { %10026 = vmatpush3.bf16.msra.mxu0 %v10492_v12  ;;  %9646 = vmatprep.subr.bf16.mxu1 %v10409_v0 }
 0x190   :  { %10027 = vmatprep.subr.bf16.mxu0 %v10409_v0  ;;  %9396 = vmatprep.mubr.msk.f32.mxu0 %vm10410_vm0, %v10411_v1 }
 0x191   :  { %8693 = vmatmul.mubr.f32.vlgmr.msra.gmra.mrb[2].mxu1 %v1627_v20 }
 0x192   :  { %9648 = vmatpush3.bf16.msra.mxu1 %v10631_v63  ;;  %8703 = vmatprep.mubr.msk.f32.mxu1 %vm10410_vm0, %v10411_v1 }
 0x193   :  { %10029 = vmatpush3.bf16.msra.mxu0 %v10497_v18  ;;  %9649 = vmatprep.subr.bf16.mxu1 %v10409_v0 }
 0x194   :  { %10030 = vmatprep.subr.bf16.mxu0 %v10409_v0 }
 0x196   :  { %9651 = vmatpush3.bf16.msra.mxu1 %v10638_v11  ;;  %9397 = vmatmul.mubr.f32.vlgmr.msra.gmra.mrb[14].mxu0 %v7003_v42 }
 0x197   :  { %10032 = vmatpush3.bf16.msra.mxu0 %v10503_v35  ;;  %9652 = vmatprep.subr.bf16.mxu1 %v10409_v0 }
 0x198   :  { %10033 = vmatprep.subr.bf16.mxu0 %v10409_v0  ;;  %9407 = vmatprep.mubr.msk.f32.mxu0 %vm10410_vm0, %v10411_v1 }
 0x199   :  { %8704 = vmatmul.mubr.f32.vlgmr.msra.gmra.mrb[2].mxu1 %v1628_v21 }
 0x19a   :  { %9654 = vmatpush3.bf16.msra.mxu1 %v10676_v32  ;;  %8714 = vmatprep.mubr.msk.f32.mxu1 %vm10410_vm0, %v10411_v1 }
 0x19b   :  { %10035 = vmatpush3.bf16.msra.mxu0 %v10506_v36  ;;  %9655 = vmatprep.subr.bf16.mxu1 %v10409_v0 }
 0x19c   :  { %10036 = vmatprep.subr.bf16.mxu0 %v10409_v0 }
 0x19e   :  { %9657 = vmatpush3.bf16.msra.mxu1 %v10679_v33  ;;  %9408 = vmatmul.mubr.f32.vlgmr.msra.gmra.mrb[14].mxu0 %v10879_v27 }
 0x19f   :  { %10038 = vmatpush3.bf16.msra.mxu0 %v10512_v37  ;;  %9658 = vmatprep.subr.bf16.mxu1 %v10409_v0 }
 0x1a0   :  { %10039 = vmatprep.subr.bf16.mxu0 %v10409_v0  ;;  %9418 = vmatprep.mubr.msk.f32.mxu0 %vm10410_vm0, %v10411_v1 }
 0x1a1   :  { %8715 = vmatmul.mubr.f32.vlgmr.msra.gmra.mrb[2].mxu1 %v10849_v19  ;;  %v2526_v35 = vpop.f32.mrb[4].mxu0 }
 0x1a2   :  { %v10100_v36 = vadd.f32 %v2526_v35, %v10754_v54  ;;  %9660 = vmatpush3.bf16.msra.mxu1 %v10631_v63  ;;  %v8793_v43 = vpop.f32.mrb[5].mxu0  ;;  %8725 = vmatprep.mubr.msk.f32.mxu1 %vm10410_vm0, %v10411_v1  ;;  %v11144_v35 = vld [vmem:[%s11240_s4] sm:$0x1]  ;;  %s10412_s4 = smov [#allocation8]  }
 0x1a3   :  { %10041 = vmatpush3.bf16.msra.mxu0 %v10517_v38  ;;  %9661 = vmatprep.subr.bf16.mxu1 %v10409_v0  ;;  %s7974_s8 = sshll.u32 %s10412_s4, 4  ;;  %s7975_s8 = int_to_ptr.vmem [resolvable:$true] %s7974_s8 }
 0x1a4   :  { %v2530_v37 = vmax.f32 %v10100_v36, 0.0  ;;  %10042 = vmatprep.subr.bf16.mxu0 %v10409_v0  ;;  %s10374_s9 = scalar_lea.vmem %s7975_s8, 16  ;;  %s10378_s10 = scalar_lea.vmem %s7975_s8, 32 }
 0x1a5   :  { %p10375_p10 = scmp.ne.s32.totalorder %s7975_s8, %s10374_s9  ;;  %p10379_p11 = scmp.lt.s32.totalorder %s7975_s8, %s7975_s8 }
 0x1a6   :  { %v2532_v44 = vsel %vm87_vm1, %v2530_v37, 0  ;;  %9663 = vmatpush3.bf16.msra.mxu1 %v10638_v11  ;;  %9419 = vmatmul.mubr.f32.vlgmr.msra.gmra.mrb[14].mxu0 %v10887_v28  ;;  %p10380_p12 = scmp.lt.s32.totalorder %s10378_s10, %s10374_s9 }
 0x1a7   :  { %v10948_v45 = vand.u32 4294901760, %v2532_v44  ;;  %10044 = vmatpush3.bf16.msra.mxu0 %v10492_v12  ;;  %9700 = vmatprep.subr.bf16.mxu1 %v10409_v0 }
 0x1a8   :  { %10045 = vmatprep.subr.bf16.mxu0 %v10409_v0  ;;  %9429 = vmatprep.mubr.msk.f32.mxu0 %vm10410_vm0, %v10411_v1  ;;  %p10381_p13 = por %p10380_p12, %p10379_p11 }
 0x1a9   :  { %v2604_v38 = vsub.f32 %v2532_v44, %v10948_v45  ;;  %8726 = vmatmul.mubr.f32.vlgmr.msra.gmra.mrb[2].mxu1 %v10849_v19 }
 0x1aa   :  { %9702 = vmatpush3.bf16.msra.mxu1 %v10631_v63  ;;  %8802 = vmatprep.mubr.msk.f32.mxu1 %vm10410_vm0, %v10411_v1  ;;  %p10382_p0 = pnand %p10381_p13, %p10375_p10 }
 0x1ab   :  { %v2605_v46 = vand.u32 4294901760, %v2604_v38  ;;  %10047 = vmatpush3.bf16.msra.mxu0 %v10497_v18  ;;  %9703 = vmatprep.subr.bf16.mxu1 %v10409_v0 }
 0x1ac   :  { %10048 = vmatprep.subr.bf16.mxu0 %v10409_v0 }
 0x1ad   :  { %v2606_v47 = vsub.f32 %v2604_v38, %v2605_v46 }
 0x1ae   :  { %9705 = vmatpush3.bf16.msra.mxu1 %v10638_v11  ;;  %9430 = vmatmul.mubr.f32.vlgmr.msra.gmra.mrb[14].mxu0 %v7001_v34 }
 0x1af   :  { %10050 = vmatpush3.bf16.msra.mxu0 %v10529_v39  ;;  %v2607_v48 = vand.u32 4294901760, %v2606_v47  ;;  %9706 = vmatprep.subr.bf16.mxu1 %v10409_v0 }
 0x1b0   :  { %10051 = vmatprep.subr.bf16.mxu0 %v10409_v0  ;;  %9440 = vmatprep.mubr.msk.f32.mxu0 %vm10410_vm0, %v10411_v1 }
 0x1b1   :  { %8803 = vmatmul.mubr.f32.vlgmr.msra.gmra.mrb[4].mxu1 %v2607_v48 }
 0x1b2   :  { %9708 = vmatpush3.bf16.msra.mxu1 %v10648_v23  ;;  %8813 = vmatprep.mubr.msk.f32.mxu1 %vm10410_vm0, %v10411_v1 }
 0x1b3   :  { %10053 = vmatpush3.bf16.msra.mxu0 %v10533_v41  ;;  %9709 = vmatprep.subr.bf16.mxu1 %v10409_v0 }
 0x1b4   :  { %10054 = vmatprep.subr.bf16.mxu0 %v10409_v0 }
 0x1b6   :  { %9711 = vmatpush3.bf16.msra.mxu1 %v10652_v29  ;;  %9441 = vmatmul.mubr.f32.vlgmr.msra.gmra.mrb[14].mxu0 %v10879_v27 }
 0x1b7   :  { %10056 = vmatpush3.bf16.msra.mxu0 %v10492_v12  ;;  %9712 = vmatprep.subr.bf16.mxu1 %v10409_v0 }
 0x1b8   :  { %10057 = vmatprep.subr.bf16.mxu0 %v10409_v0  ;;  %9451 = vmatprep.mubr.msk.f32.mxu0 %vm10410_vm0, %v10411_v1 }
 0x1b9   :  { %8814 = vmatmul.mubr.f32.vlgmr.msra.gmra.mrb[4].mxu1 %v10948_v45 }
 0x1ba   :  { %9714 = vmatpush3.bf16.msra.mxu1 %v10658_v30  ;;  %8824 = vmatprep.mubr.msk.f32.mxu1 %vm10410_vm0, %v10411_v1 }
 0x1bb   :  { %10059 = vmatpush3.bf16.msra.mxu0 %v10497_v18  ;;  %9715 = vmatprep.subr.bf16.mxu1 %v10409_v0 }
 0x1be   :  { %9717 = vmatpush3.bf16.msra.mxu1 %v10661_v31  ;;  %9452 = vmatmul.mubr.f32.vlgmr.msra.gmra.mrb[14].mxu0 %v10879_v27 }
 0x1bf   :  { %9718 = vmatprep.subr.bf16.mxu1 %v10409_v0 }
 0x1c1   :  { %8825 = vmatmul.mubr.f32.vlgmr.msra.gmra.mrb[4].mxu1 %v2604_v38 }
 0x1c2   :  { %9720 = vmatpush3.bf16.msra.mxu1 %v10631_v63  ;;  %8835 = vmatprep.mubr.msk.f32.mxu1 %vm10410_vm0, %v10411_v1 }
 0x1c3   :  { %9721 = vmatprep.subr.bf16.mxu1 %v10409_v0 }
 0x1c6   :  { %9723 = vmatpush3.bf16.msra.mxu1 %v10638_v11 }
 0x1c7   :  { %9724 = vmatprep.subr.bf16.mxu1 %v10409_v0 }
 0x1c9   :  { %8836 = vmatmul.mubr.f32.vlgmr.msra.gmra.mrb[4].mxu1 %v2605_v46 }
 0x1ca   :  { %9726 = vmatpush3.bf16.msra.mxu1 %v10676_v32  ;;  %8846 = vmatprep.mubr.msk.f32.mxu1 %vm10410_vm0, %v10411_v1 }
 0x1cb   :  { %9727 = vmatprep.subr.bf16.mxu1 %v10409_v0 }
 0x1ce   :  { %9729 = vmatpush3.bf16.msra.mxu1 %v10679_v33 }
 0x1cf   :  { %9730 = vmatprep.subr.bf16.mxu1 %v10409_v0 }
 0x1d1   :  { %8847 = vmatmul.mubr.f32.vlgmr.msra.gmra.mrb[4].mxu1 %v10948_v45  ;;  %v3503_v12 = vpop.f32.mrb[6].mxu0 }
 0x1d2   :  { %v10102_v18 = vadd.f32 %v3503_v12, %v10754_v54  ;;  %9732 = vmatpush3.bf16.msra.mxu1 %v10631_v63  ;;  %v8925_v39 = vpop.f32.mrb[7].mxu0  ;;  %8857 = vmatprep.mubr.msk.f32.mxu1 %vm10410_vm0, %v10411_v1 }
 0x1d3   :  { %9733 = vmatprep.subr.bf16.mxu1 %v10409_v0 }
 0x1d4   :  { %v3507_v41 = vmax.f32 %v10102_v18, 0.0 }
 0x1d6   :  { %v3509_v49 = vsel %vm87_vm1, %v3507_v41, 0  ;;  %9735 = vmatpush3.bf16.msra.mxu1 %v10638_v11 }
 0x1d7   :  { %v3580_v50 = vand.u32 4294901760, %v3509_v49  ;;  %9772 = vmatprep.subr.bf16.mxu1 %v10409_v0 }
 0x1d9   :  { %v3581_v51 = vsub.f32 %v3509_v49, %v3580_v50  ;;  %8858 = vmatmul.mubr.f32.vlgmr.msra.gmra.mrb[4].mxu1 %v10948_v45 }
 0x1da   :  { %9774 = vmatpush3.bf16.msra.mxu1 %v10631_v63  ;;  %8934 = vmatprep.mubr.msk.f32.mxu1 %vm10410_vm0, %v10411_v1 }
 0x1db   :  { %v3582_v52 = vand.u32 4294901760, %v3581_v51  ;;  %9775 = vmatprep.subr.bf16.mxu1 %v10409_v0 }
 0x1dd   :  { %v3583_v53 = vsub.f32 %v3581_v51, %v3582_v52 }
 0x1de   :  { %9777 = vmatpush3.bf16.msra.mxu1 %v10638_v11 }
 0x1df   :  { %v3584_v55 = vand.u32 4294901760, %v3583_v53  ;;  %9778 = vmatprep.subr.bf16.mxu1 %v10409_v0 }
 0x1e1   :  { %8935 = vmatmul.mubr.f32.vlgmr.msra.gmra.mrb[6].mxu1 %v3584_v55 }
 0x1e2   :  { %9780 = vmatpush3.bf16.msra.mxu1 %v10648_v23  ;;  %8945 = vmatprep.mubr.msk.f32.mxu1 %vm10410_vm0, %v10411_v1 }
 0x1e3   :  { %9781 = vmatprep.subr.bf16.mxu1 %v10409_v0 }
 0x1e6   :  { %9783 = vmatpush3.bf16.msra.mxu1 %v10652_v29 }
 0x1e7   :  { %9784 = vmatprep.subr.bf16.mxu1 %v10409_v0 }
 0x1e9   :  { %8946 = vmatmul.mubr.f32.vlgmr.msra.gmra.mrb[6].mxu1 %v3580_v50 }
 0x1ea   :  { %9786 = vmatpush3.bf16.msra.mxu1 %v10658_v30  ;;  %8956 = vmatprep.mubr.msk.f32.mxu1 %vm10410_vm0, %v10411_v1 }
 0x1eb   :  { %9787 = vmatprep.subr.bf16.mxu1 %v10409_v0 }
 0x1ee   :  { %9789 = vmatpush3.bf16.msra.mxu1 %v10661_v31 }
 0x1ef   :  { %9790 = vmatprep.subr.bf16.mxu1 %v10409_v0 }
 0x1f1   :  { %8957 = vmatmul.mubr.f32.vlgmr.msra.gmra.mrb[6].mxu1 %v3581_v51 }
 0x1f2   :  { %9792 = vmatpush3.bf16.msra.mxu1 %v10631_v63  ;;  %8967 = vmatprep.mubr.msk.f32.mxu1 %vm10410_vm0, %v10411_v1 }
 0x1f3   :  { %9793 = vmatprep.subr.bf16.mxu1 %v10409_v0 }
 0x1f6   :  { %9795 = vmatpush3.bf16.msra.mxu1 %v10638_v11 }
 0x1f7   :  { %9796 = vmatprep.subr.bf16.mxu1 %v10409_v0 }
 0x1f9   :  { %8968 = vmatmul.mubr.f32.vlgmr.msra.gmra.mrb[6].mxu1 %v3582_v52 }
 0x1fa   :  { %9798 = vmatpush3.bf16.msra.mxu1 %v10676_v32  ;;  %8978 = vmatprep.mubr.msk.f32.mxu1 %vm10410_vm0, %v10411_v1 }
 0x1fb   :  { %9799 = vmatprep.subr.bf16.mxu1 %v10409_v0 }
 0x1fe   :  { %9801 = vmatpush3.bf16.msra.mxu1 %v10679_v33 }
 0x1ff   :  { %9802 = vmatprep.subr.bf16.mxu1 %v10409_v0 }
 0x201   :  { %8979 = vmatmul.mubr.f32.vlgmr.msra.gmra.mrb[6].mxu1 %v3580_v50  ;;  %v4480_v56 = vpop.f32.mrb[8].mxu0 }
 0x202   :  { %v10104_v57 = vadd.f32 %v4480_v56, %v10754_v54  ;;  %9804 = vmatpush3.bf16.msra.mxu1 %v10631_v63  ;;  %v9057_v58 = vpop.f32.mrb[9].mxu0  ;;  %8989 = vmatprep.mubr.msk.f32.mxu1 %vm10410_vm0, %v10411_v1 }
 0x203   :  { %9805 = vmatprep.subr.bf16.mxu1 %v10409_v0 }
 0x204   :  { %v4484_v59 = vmax.f32 %v10104_v57, 0.0 }
 0x206   :  { %v4486_v60 = vsel %vm87_vm1, %v4484_v59, 0  ;;  %9807 = vmatpush3.bf16.msra.mxu1 %v10638_v11 }
 0x207   :  { %v4557_v61 = vand.u32 4294901760, %v4486_v60  ;;  %9844 = vmatprep.subr.bf16.mxu1 %v10409_v0 }
 0x209   :  { %v4558_v62 = vsub.f32 %v4486_v60, %v4557_v61  ;;  %8990 = vmatmul.mubr.f32.vlgmr.msra.gmra.mrb[6].mxu1 %v3580_v50 }
 0x20a   :  { %9846 = vmatpush3.bf16.msra.mxu1 %v10631_v63  ;;  %9066 = vmatprep.mubr.msk.f32.mxu1 %vm10410_vm0, %v10411_v1 }
 0x20b   :  { %v4559_v2 = vand.u32 4294901760, %v4558_v62  ;;  %9847 = vmatprep.subr.bf16.mxu1 %v10409_v0 }
 0x20d   :  { %v4560_v3 = vsub.f32 %v4558_v62, %v4559_v2 }
 0x20e   :  { %9849 = vmatpush3.bf16.msra.mxu1 %v10638_v11 }
 0x20f   :  { %v4561_v4 = vand.u32 4294901760, %v4560_v3  ;;  %9850 = vmatprep.subr.bf16.mxu1 %v10409_v0 }
 0x211   :  { %9067 = vmatmul.mubr.f32.vlgmr.msra.gmra.mrb[8].mxu1 %v4561_v4 }
 0x212   :  { %9852 = vmatpush3.bf16.msra.mxu1 %v10648_v23  ;;  %9077 = vmatprep.mubr.msk.f32.mxu1 %vm10410_vm0, %v10411_v1 }
 0x213   :  { %9853 = vmatprep.subr.bf16.mxu1 %v10409_v0 }
 0x216   :  { %9855 = vmatpush3.bf16.msra.mxu1 %v10652_v29 }
 0x217   :  { %9856 = vmatprep.subr.bf16.mxu1 %v10409_v0 }
 0x219   :  { %9078 = vmatmul.mubr.f32.vlgmr.msra.gmra.mrb[8].mxu1 %v4557_v61 }
 0x21a   :  { %9858 = vmatpush3.bf16.msra.mxu1 %v10658_v30  ;;  %9088 = vmatprep.mubr.msk.f32.mxu1 %vm10410_vm0, %v10411_v1 }
 0x21b   :  { %9859 = vmatprep.subr.bf16.mxu1 %v10409_v0 }
 0x21e   :  { %9861 = vmatpush3.bf16.msra.mxu1 %v10661_v31 }
 0x21f   :  { %9862 = vmatprep.subr.bf16.mxu1 %v10409_v0 }
 0x221   :  { %9089 = vmatmul.mubr.f32.vlgmr.msra.gmra.mrb[8].mxu1 %v4558_v62 }
 0x222   :  { %9864 = vmatpush3.bf16.msra.mxu1 %v10631_v63  ;;  %9099 = vmatprep.mubr.msk.f32.mxu1 %vm10410_vm0, %v10411_v1 }
 0x223   :  { %9865 = vmatprep.subr.bf16.mxu1 %v10409_v0 }
 0x226   :  { %9867 = vmatpush3.bf16.msra.mxu1 %v10638_v11 }
 0x227   :  { %9868 = vmatprep.subr.bf16.mxu1 %v10409_v0 }
 0x229   :  { %9100 = vmatmul.mubr.f32.vlgmr.msra.gmra.mrb[8].mxu1 %v4559_v2 }
 0x22a   :  { %9870 = vmatpush3.bf16.msra.mxu1 %v10676_v32  ;;  %9110 = vmatprep.mubr.msk.f32.mxu1 %vm10410_vm0, %v10411_v1 }
 0x22b   :  { %9871 = vmatprep.subr.bf16.mxu1 %v10409_v0 }
 0x22e   :  { %9873 = vmatpush3.bf16.msra.mxu1 %v10679_v33 }
 0x22f   :  { %9874 = vmatprep.subr.bf16.mxu1 %v10409_v0 }
 0x231   :  { %9111 = vmatmul.mubr.f32.vlgmr.msra.gmra.mrb[8].mxu1 %v4557_v61  ;;  %v5457_v5 = vpop.f32.mrb[10].mxu0 }
 0x232   :  { %v10106_v6 = vadd.f32 %v5457_v5, %v10754_v54  ;;  %9876 = vmatpush3.bf16.msra.mxu1 %v10631_v63  ;;  %v9189_v7 = vpop.f32.mrb[11].mxu0  ;;  %9121 = vmatprep.mubr.msk.f32.mxu1 %vm10410_vm0, %v10411_v1 }
 0x233   :  { %9877 = vmatprep.subr.bf16.mxu1 %v10409_v0 }
 0x234   :  { %v5461_v8 = vmax.f32 %v10106_v6, 0.0 }
 0x236   :  { %v5463_v9 = vsel %vm87_vm1, %v5461_v8, 0  ;;  %9879 = vmatpush3.bf16.msra.mxu1 %v10638_v11 }
 0x237   :  { %v5534_v10 = vand.u32 4294901760, %v5463_v9  ;;  %9916 = vmatprep.subr.bf16.mxu1 %v10409_v0 }
 0x239   :  { %v5535_v13 = vsub.f32 %v5463_v9, %v5534_v10  ;;  %9122 = vmatmul.mubr.f32.vlgmr.msra.gmra.mrb[8].mxu1 %v4557_v61 }
 0x23a   :  { %9918 = vmatpush3.bf16.msra.mxu1 %v10631_v63  ;;  %9198 = vmatprep.mubr.msk.f32.mxu1 %vm10410_vm0, %v10411_v1 }
 0x23b   :  { %v5536_v14 = vand.u32 4294901760, %v5535_v13  ;;  %9919 = vmatprep.subr.bf16.mxu1 %v10409_v0 }
 0x23d   :  { %v5537_v15 = vsub.f32 %v5535_v13, %v5536_v14 }
 0x23e   :  { %9921 = vmatpush3.bf16.msra.mxu1 %v10638_v11 }
 0x23f   :  { %v5538_v16 = vand.u32 4294901760, %v5537_v15  ;;  %9922 = vmatprep.subr.bf16.mxu1 %v10409_v0 }
 0x241   :  { %9199 = vmatmul.mubr.f32.vlgmr.msra.gmra.mrb[10].mxu1 %v5538_v16 }
 0x242   :  { %9924 = vmatpush3.bf16.msra.mxu1 %v10648_v23  ;;  %9209 = vmatprep.mubr.msk.f32.mxu1 %vm10410_vm0, %v10411_v1 }
 0x243   :  { %9925 = vmatprep.subr.bf16.mxu1 %v10409_v0 }
 0x246   :  { %9927 = vmatpush3.bf16.msra.mxu1 %v10652_v29 }
 0x247   :  { %9928 = vmatprep.subr.bf16.mxu1 %v10409_v0 }
 0x249   :  { %9210 = vmatmul.mubr.f32.vlgmr.msra.gmra.mrb[10].mxu1 %v5534_v10 }
 0x24a   :  { %9930 = vmatpush3.bf16.msra.mxu1 %v10658_v30  ;;  %9220 = vmatprep.mubr.msk.f32.mxu1 %vm10410_vm0, %v10411_v1 }
 0x24b   :  { %9931 = vmatprep.subr.bf16.mxu1 %v10409_v0 }
 0x24c   :  { %v1061_v17 = vpop.f32.mrb[0].mxu1 }
 0x24d   :  { %v8595_v19 = vpop.f32.mrb[1].mxu1  ;;  %v11151_v43 = vadd.f32 %v1061_v17, %v11144_v35 }
 0x24e   :  { %9933 = vmatpush3.bf16.msra.mxu1 %v10661_v31 }
 0x24f   :  { %9934 = vmatprep.subr.bf16.mxu1 %v10409_v0 }
 0x251   :  { %9221 = vmatmul.mubr.f32.vlgmr.msra.gmra.mrb[10].mxu1 %v5535_v13 }
 0x252   :  { %9936 = vmatpush3.bf16.msra.mxu1 %v10631_v63  ;;  %9231 = vmatprep.mubr.msk.f32.mxu1 %vm10410_vm0, %v10411_v1 }
 0x253   :  { %9937 = vmatprep.subr.bf16.mxu1 %v10409_v0 }
 0x256   :  { %9939 = vmatpush3.bf16.msra.mxu1 %v10638_v11 }
 0x257   :  { %9940 = vmatprep.subr.bf16.mxu1 %v10409_v0 }
 0x259   :  { %9232 = vmatmul.mubr.f32.vlgmr.msra.gmra.mrb[10].mxu1 %v5536_v14 }
 0x25a   :  { %9942 = vmatpush3.bf16.msra.mxu1 %v10676_v32  ;;  %9242 = vmatprep.mubr.msk.f32.mxu1 %vm10410_vm0, %v10411_v1 }
 0x25b   :  { %9943 = vmatprep.subr.bf16.mxu1 %v10409_v0 }
 0x25e   :  { %9945 = vmatpush3.bf16.msra.mxu1 %v10679_v33 }
 0x25f   :  { %9946 = vmatprep.subr.bf16.mxu1 %v10409_v0 }
 0x261   :  { %9243 = vmatmul.mubr.f32.vlgmr.msra.gmra.mrb[10].mxu1 %v5534_v10  ;;  %v6434_v20 = vpop.f32.mrb[12].mxu0 }
 0x262   :  { %v10108_v21 = vadd.f32 %v6434_v20, %v10754_v54  ;;  %9948 = vmatpush3.bf16.msra.mxu1 %v10631_v63  ;;  %v9321_v24 = vpop.f32.mrb[13].mxu0  ;;  %9253 = vmatprep.mubr.msk.f32.mxu1 %vm10410_vm0, %v10411_v1 }
 0x263   :  { %9949 = vmatprep.subr.bf16.mxu1 %v10409_v0 }
 0x264   :  { %v6438_v25 = vmax.f32 %v10108_v21, 0.0 }
 0x266   :  { %v6440_v26 = vsel %vm87_vm1, %v6438_v25, 0  ;;  %9951 = vmatpush3.bf16.msra.mxu1 %v10638_v11 }
 0x267   :  { %v6511_v27 = vand.u32 4294901760, %v6440_v26  ;;  %9988 = vmatprep.subr.bf16.mxu1 %v10409_v0 }
 0x269   :  { %v6512_v28 = vsub.f32 %v6440_v26, %v6511_v27  ;;  %9254 = vmatmul.mubr.f32.vlgmr.msra.gmra.mrb[10].mxu1 %v5534_v10 }
 0x26a   :  { %9990 = vmatpush3.bf16.msra.mxu1 %v10631_v63  ;;  %9330 = vmatprep.mubr.msk.f32.mxu1 %vm10410_vm0, %v10411_v1 }
 0x26b   :  { %v6513_v34 = vand.u32 4294901760, %v6512_v28  ;;  %9991 = vmatprep.subr.bf16.mxu1 %v10409_v0 }
 0x26d   :  { %v6514_v40 = vsub.f32 %v6512_v28, %v6513_v34 }
 0x26e   :  { %9993 = vmatpush3.bf16.msra.mxu1 %v10638_v11 }
 0x26f   :  { %v6515_v42 = vand.u32 4294901760, %v6514_v40  ;;  %9994 = vmatprep.subr.bf16.mxu1 %v10409_v0 }
 0x271   :  { %9331 = vmatmul.mubr.f32.vlgmr.msra.gmra.mrb[12].mxu1 %v6515_v42 }
 0x272   :  { %9996 = vmatpush3.bf16.msra.mxu1 %v10648_v23  ;;  %9341 = vmatprep.mubr.msk.f32.mxu1 %vm10410_vm0, %v10411_v1 }
 0x273   :  { %9997 = vmatprep.subr.bf16.mxu1 %v10409_v0 }
 0x276   :  { %9999 = vmatpush3.bf16.msra.mxu1 %v10652_v29 }
 0x277   :  { %10000 = vmatprep.subr.bf16.mxu1 %v10409_v0 }
 0x279   :  { %9342 = vmatmul.mubr.f32.vlgmr.msra.gmra.mrb[12].mxu1 %v6511_v27 }
 0x27a   :  { %10002 = vmatpush3.bf16.msra.mxu1 %v10658_v30  ;;  %9352 = vmatprep.mubr.msk.f32.mxu1 %vm10410_vm0, %v10411_v1 }
 0x27b   :  { %10003 = vmatprep.subr.bf16.mxu1 %v10409_v0 }
 0x27c   :  { %v2038_v36 = vpop.f32.mrb[2].mxu1 }
 0x27d   :  { %v11154_v37 = vadd.f32 %v2038_v36, %v11144_v35  ;;  %v8727_v44 = vpop.f32.mrb[3].mxu1 }
 0x27e   :  { %10005 = vmatpush3.bf16.msra.mxu1 %v10661_v31 }
 0x27f   :  { %v7904_v45 = vmax.f32 %v11151_v43, %v11154_v37  ;;  %10006 = vmatprep.subr.bf16.mxu1 %v10409_v0 }
 0x281   :  { %9353 = vmatmul.mubr.f32.vlgmr.msra.gmra.mrb[12].mxu1 %v6512_v28 }
 0x282   :  { %10008 = vmatpush3.bf16.msra.mxu1 %v10631_v63  ;;  %9363 = vmatprep.mubr.msk.f32.mxu1 %vm10410_vm0, %v10411_v1 }
 0x283   :  { %10009 = vmatprep.subr.bf16.mxu1 %v10409_v0 }
 0x286   :  { %10011 = vmatpush3.bf16.msra.mxu1 %v10638_v11 }
 0x287   :  { %10012 = vmatprep.subr.bf16.mxu1 %v10409_v0 }
 0x289   :  { %9364 = vmatmul.mubr.f32.vlgmr.msra.gmra.mrb[12].mxu1 %v6513_v34 }
 0x28a   :  { %10014 = vmatpush3.bf16.msra.mxu1 %v10676_v32  ;;  %9374 = vmatprep.mubr.msk.f32.mxu1 %vm10410_vm0, %v10411_v1 }
 0x28b   :  { %10015 = vmatprep.subr.bf16.mxu1 %v10409_v0 }
 0x28e   :  { %10017 = vmatpush3.bf16.msra.mxu1 %v10679_v33 }
 0x28f   :  { %10018 = vmatprep.subr.bf16.mxu1 %v10409_v0 }
 0x291   :  { %9375 = vmatmul.mubr.f32.vlgmr.msra.gmra.mrb[12].mxu1 %v6511_v27  ;;  %v7411_v38 = vpop.f32.mrb[14].mxu0 }
 0x292   :  { %v10110_v46 = vadd.f32 %v7411_v38, %v10754_v54  ;;  %10020 = vmatpush3.bf16.msra.mxu1 %v10631_v63  ;;  %v9453_v47 = vpop.f32.mrb[15].mxu0  ;;  %9385 = vmatprep.mubr.msk.f32.mxu1 %vm10410_vm0, %v10411_v1 }
 0x293   :  { %10021 = vmatprep.subr.bf16.mxu1 %v10409_v0 }
 0x294   :  { %v7415_v48 = vmax.f32 %v10110_v46, 0.0 }
 0x296   :  { %v7417_v12 = vsel %vm87_vm1, %v7415_v48, 0  ;;  %10023 = vmatpush3.bf16.msra.mxu1 %v10638_v11 }
 0x297   :  { %v7488_v18 = vand.u32 4294901760, %v7417_v12  ;;  %10060 = vmatprep.subr.bf16.mxu1 %v10409_v0 }
 0x299   :  { %v7489_v39 = vsub.f32 %v7417_v12, %v7488_v18  ;;  %9386 = vmatmul.mubr.f32.vlgmr.msra.gmra.mrb[12].mxu1 %v6511_v27 }
 0x29a   :  { %10062 = vmatpush3.bf16.msra.mxu1 %v10631_v63  ;;  %9462 = vmatprep.mubr.msk.f32.mxu1 %vm10410_vm0, %v10411_v1 }
 0x29b   :  { %v7490_v54 = vand.u32 4294901760, %v7489_v39  ;;  %10063 = vmatprep.subr.bf16.mxu1 %v10409_v0 }
 0x29d   :  { %v7491_v41 = vsub.f32 %v7489_v39, %v7490_v54 }
 0x29e   :  { %10065 = vmatpush3.bf16.msra.mxu1 %v10638_v11 }
 0x29f   :  { %v7492_v49 = vand.u32 4294901760, %v7491_v41  ;;  %10066 = vmatprep.subr.bf16.mxu1 %v10409_v0 }
 0x2a1   :  { %9463 = vmatmul.mubr.f32.vlgmr.msra.gmra.mrb[14].mxu1 %v7492_v49 }
 0x2a2   :  { %10068 = vmatpush3.bf16.msra.mxu1 %v10648_v23  ;;  %9473 = vmatprep.mubr.msk.f32.mxu1 %vm10410_vm0, %v10411_v1 }
 0x2a3   :  { %10069 = vmatprep.subr.bf16.mxu1 %v10409_v0 }
 0x2a6   :  { %10071 = vmatpush3.bf16.msra.mxu1 %v10652_v29 }
 0x2a7   :  { %10072 = vmatprep.subr.bf16.mxu1 %v10409_v0 }
 0x2a9   :  { %9474 = vmatmul.mubr.f32.vlgmr.msra.gmra.mrb[14].mxu1 %v7488_v18 }
 0x2aa   :  { %10074 = vmatpush3.bf16.msra.mxu1 %v10658_v30  ;;  %9484 = vmatprep.mubr.msk.f32.mxu1 %vm10410_vm0, %v10411_v1 }
 0x2ab   :  { %10075 = vmatprep.subr.bf16.mxu1 %v10409_v0 }
 0x2ac   :  { %v3015_v50 = vpop.f32.mrb[4].mxu1 }
 0x2ad   :  { %v10101_v23 = vadd.f32 %v3015_v50, %v11144_v35  ;;  %v8859_v51 = vpop.f32.mrb[5].mxu1 }
 0x2ae   :  { %10077 = vmatpush3.bf16.msra.mxu1 %v10661_v31 }
 0x2af   :  { %v7905_v52 = vmax.f32 %v7904_v45, %v10101_v23  ;;  %10078 = vmatprep.subr.bf16.mxu1 %v10409_v0 }
 0x2b1   :  { %9485 = vmatmul.mubr.f32.vlgmr.msra.gmra.mrb[14].mxu1 %v7489_v39 }
 0x2b2   :  { %10080 = vmatpush3.bf16.msra.mxu1 %v10631_v63  ;;  %9495 = vmatprep.mubr.msk.f32.mxu1 %vm10410_vm0, %v10411_v1 }
 0x2b3   :  { %10081 = vmatprep.subr.bf16.mxu1 %v10409_v0 }
 0x2b6   :  { %10083 = vmatpush3.bf16.msra.mxu1 %v10638_v11 }
 0x2b7   :  { %10084 = vmatprep.subr.bf16.mxu1 %v10409_v0 }
 0x2b9   :  { %9496 = vmatmul.mubr.f32.vlgmr.msra.gmra.mrb[14].mxu1 %v7490_v54 }
 0x2ba   :  { %10086 = vmatpush3.bf16.msra.mxu1 %v10676_v32  ;;  %9506 = vmatprep.mubr.msk.f32.mxu1 %vm10410_vm0, %v10411_v1 }
 0x2bb   :  { %10087 = vmatprep.subr.bf16.mxu1 %v10409_v0 }
 0x2be   :  { %10089 = vmatpush3.bf16.msra.mxu1 %v10679_v33 }
 0x2bf   :  { %10090 = vmatprep.subr.bf16.mxu1 %v10409_v0 }
 0x2c1   :  { %9507 = vmatmul.mubr.f32.vlgmr.msra.gmra.mrb[14].mxu1 %v7488_v18 }
 0x2c2   :  { %10092 = vmatpush3.bf16.msra.mxu1 %v10631_v63  ;;  %9517 = vmatprep.mubr.msk.f32.mxu1 %vm10410_vm0, %v10411_v1 }
 0x2c3   :  { %10093 = vmatprep.subr.bf16.mxu1 %v10409_v0 }
 0x2c6   :  { %10095 = vmatpush3.bf16.msra.mxu1 %v10638_v11 }
 0x2c9   :  { %9518 = vmatmul.mubr.f32.vlgmr.msra.gmra.mrb[14].mxu1 %v7488_v18 }
 0x2dc   :  { %v3992_v29 = vpop.f32.mrb[6].mxu1 }
 0x2dd   :  { %v10103_v30 = vadd.f32 %v3992_v29, %v11144_v35  ;;  %v8991_v31 = vpop.f32.mrb[7].mxu1 }
 0x2de   :  { %v10303_v31 = vld [vmem:[#allocation2 + $0x2] sm:$0x1] }
 0x2df   :  { %v7906_v32 = vmax.f32 %v7905_v52, %v10103_v30  ;;  %v10302_v52 = vld [vmem:[#allocation2 + $0x1] sm:$0x1] }
 0x30c   :  { %v4969_v53 = vpop.f32.mrb[8].mxu1 }
 0x30d   :  { %v10105_v33 = vadd.f32 %v4969_v53, %v11144_v35  ;;  %v9123_v55 = vpop.f32.mrb[9].mxu1 }
 0x30f   :  { %v7907_v56 = vmax.f32 %v7906_v32, %v10105_v33 }
 0x33c   :  { %v5946_v57 = vpop.f32.mrb[10].mxu1 }
 0x33d   :  { %v10107_v63 = vadd.f32 %v5946_v57, %v11144_v35  ;;  %v9255_v58 = vpop.f32.mrb[11].mxu1  ;;  %v10305_v57 = vld [vmem:[#allocation2 + $0x4] sm:$0x1] }
 0x33f   :  { %v7908_v1 = vmax.f32 %v7907_v56, %v10107_v63 }
 0x36c   :  { %v6923_v59 = vpop.f32.mrb[12].mxu1 }
 0x36d   :  { %v10109_v0 = vadd.f32 %v6923_v59, %v11144_v35  ;;  %v9387_v11 = vpop.f32.mrb[13].mxu1 }
 0x36e   :  { %v10307_v11 = vld [vmem:[#allocation2 + $0x6] sm:$0x1] }
 0x36f   :  { %v7909_v60 = vmax.f32 %v7908_v1, %v10109_v0  ;;  %v10306_v1 = vld [vmem:[#allocation2 + $0x5] sm:$0x1] }
 0x39c   :  { %v7900_v61 = vpop.f32.mrb[14].mxu1 }
 0x39d   :  { %v10111_v62 = vadd.f32 %v7900_v61, %v11144_v35  ;;  %v9519_v2 = vpop.f32.mrb[15].mxu1 }
 0x39f   :  { %v7910_v3 = vmax.f32 %v7909_v60, %v10111_v62 }
 0x3a1   :  { %v7911_v4 = vsub.f32 %v11151_v43, %v7910_v3  ;;  %v7914_v5 = vsub.f32 %v11154_v37, %v7910_v3  ;;  %v7917_v6 = vsub.f32 %v10101_v23, %v7910_v3  ;;  %v7920_v7 = vsub.f32 %v10103_v30, %v7910_v3  ;;  %v10301_v23 = vld [vmem:[#allocation2] sm:$0x1] }
 0x3a2   :  { %v7923_v8 = vsub.f32 %v10105_v33, %v7910_v3  ;;  %v7926_v9 = vsub.f32 %v10107_v63, %v7910_v3  ;;  %v7929_v10 = vsub.f32 %v10109_v0, %v7910_v3  ;;  %v7932_v13 = vsub.f32 %v10111_v62, %v7910_v3  ;;  %v10304_v33 = vld [vmem:[#allocation2 + $0x3] sm:$0x1] }
 0x3a3   :  { %v7912_v14 = vmul.f32 1.442695, %v7911_v4  ;;  %v7915_v15 = vmul.f32 1.442695, %v7914_v5  ;;  %v7918_v16 = vmul.f32 1.442695, %v7917_v6 }
 0x3a4   :  { %v7921_v17 = vmul.f32 1.442695, %v7920_v7  ;;  %v7924_v19 = vmul.f32 1.442695, %v7923_v8  ;;  %v7927_v20 = vmul.f32 1.442695, %v7926_v9 }
 0x3a5   :  { %10283 = vpow2.f32 %v7912_v14  ;;  %v7930_v21 = vmul.f32 1.442695, %v7929_v10  ;;  %v7933_v24 = vmul.f32 1.442695, %v7932_v13 }
 0x3a6   :  { %10285 = vpow2.f32 %v7915_v15 }
 0x3a7   :  { %10287 = vpow2.f32 %v7918_v16 }
 0x3a8   :  { %10289 = vpow2.f32 %v7921_v17 }
 0x3a9   :  { %10291 = vpow2.f32 %v7924_v19 }
 0x3aa   :  { %10293 = vpow2.f32 %v7927_v20 }
 0x3ab   :  { %10295 = vpow2.f32 %v7930_v21 }
 0x3ac   :  { %10297 = vpow2.f32 %v7933_v24 }
 0x3af   :  { %v10284_v25 = vpop.eup %10283 }
 0x3b0   :  { %v10286_v26 = vpop.eup %10285 }
 0x3b1   :  { %v7935_v27 = vadd.f32 %v10286_v26, %v10284_v25  ;;  %v10288_v28 = vpop.eup %10287 }
 0x3b2   :  { %v10290_v40 = vpop.eup %10289 }
 0x3b3   :  { %v7936_v34 = vadd.f32 %v10288_v28, %v7935_v27  ;;  %v10292_v35 = vpop.eup %10291 }
 0x3b4   :  { %v10294_v43 = vpop.eup %10293 }
 0x3b5   :  { %v7937_v42 = vadd.f32 %v10290_v40, %v7936_v34  ;;  %v10296_v44 = vpop.eup %10295 }
 0x3b6   :  { %v10298_v38 = vpop.eup %10297 }
 0x3b7   :  { %v7938_v36 = vadd.f32 %v10292_v35, %v7937_v42 }
 0x3b9   :  { %v7939_v37 = vadd.f32 %v10294_v43, %v7938_v36 }
 0x3bb   :  { %v7940_v45 = vadd.f32 %v10296_v44, %v7939_v37 }
 0x3bd   :  { %v7941_v46 = vadd.f32 %v10298_v38, %v7940_v45 }
 0x3bf   :  { %10299 = vrcp.f32 %v7941_v46 }
 0x3c9   :  { %v10300_v47 = vpop.eup %10299 }
 0x3ca   :  { %v7943_v48 = vmul.f32 %v10300_v47, %v10284_v25  ;;  %v7945_v12 = vmul.f32 %v10300_v47, %v10286_v26  ;;  %v7948_v18 = vmul.f32 %v10300_v47, %v10288_v28  ;;  %v7951_v39 = vmul.f32 %v10300_v47, %v10290_v40 }
 0x3cb   :  { %v7954_v54 = vmul.f32 %v10300_v47, %v10292_v35  ;;  %v7957_v41 = vmul.f32 %v10300_v47, %v10294_v43  ;;  %v7960_v49 = vmul.f32 %v10300_v47, %v10296_v44  ;;  %v7963_v50 = vmul.f32 %v10300_v47, %v10298_v38 }
 0x3cc   :  { %v7944_v51 = vmul.f32 %v10301_v23, %v7943_v48  ;;  %v7946_v29 = vmul.f32 %v10302_v52, %v7945_v12  ;;  %v7949_v32 = vmul.f32 %v10303_v31, %v7948_v18  ;;  %v7952_v55 = vmul.f32 %v10304_v33, %v7951_v39 }
 0x3cd   :  { %v7955_v63 = vmul.f32 %v10305_v57, %v7954_v54  ;;  %v7958_v59 = vmul.f32 %v10306_v1, %v7957_v41  ;;  %v7961_v60 = vmul.f32 %v10307_v11, %v7960_v49  ;;  %v7964_v62 = vmul.f32 %v7963_v50, %v10864_v22 }
 0x3ce   :  { %v7947_v30 = vadd.f32 %v7946_v29, %v7944_v51 }
 0x3d0   :  { %v7950_v53 = vadd.f32 %v7949_v32, %v7947_v30 }
 0x3d2   :  { %v7953_v56 = vadd.f32 %v7952_v55, %v7950_v53 }
 0x3d4   :  { %v7956_v58 = vadd.f32 %v7955_v63, %v7953_v56 }
 0x3d6   :  { %v7959_v0 = vadd.f32 %v7958_v59, %v7956_v58 }
 0x3d8   :  { %v7962_v61 = vadd.f32 %v7961_v60, %v7959_v0 }
 0x3da   :  { %v7965_v2 = vadd.f32 %v7964_v62, %v7962_v61 }
 0x3dc   :  { %7967 = vst.msk [vmem:[#allocation8] sm:$0x1] %vm7966_vm2, %v7965_v2 }
 0x3dd   :  { %10385 = shalt.err (!%p10382_p0)
}
 0x3de   :  { %s10386_s13 = scalar_lea.hbm %s11241_s5, 16 }
 0x3df   :  { %p10387_p1 = scmp.ne.s32.totalorder %s11241_s5, %s10386_s13  ;;  %p10390_p2 = scmp.lt.u32.totalorder %s10386_s13, %s11241_s5 }
 0x3e1   :  { %p10392_p3 = pnand %p10390_p2, %p10387_p1 }
 0x3e3   :  { %10395 = shalt.err (!%p10392_p3)
}
 0x3e4   :  { %7977 = dma.vmem_to_hbm [thread:$0]  %s7975_s8, 16, %s11241_s5, [#allocation4]  }
 0x3e5   :  { %10400 = dma.done.wait [#allocation4], 16  }
 0x3e6   :  { %10401 = vsyncadd [#allocation4], 4294967280 }
 0x3e7   :  { %7981 = vsyncpa [#allocation3], 1 }
 0x3e8   :  { %7982 = vsyncpa [#allocation6], 1 }
 0x3e9   :  { %7983 = vsyncpa [#allocation4], 1 }

</bundles_post_ra>
